<compile_context>
chip_gen: v5e
topology: v5e:2x2
jax: 0.10.0
libtpu: 0.0.40
codegen_flags: <defaults>
</compile_context>

<pallas_src>
import numpy as np
import jax
import jax.numpy as jnp
from jax.experimental import pallas as pl
from jax.experimental.pallas import tpu as pltpu


# ------------------------------ fused kernel --------------------------------

def _lenet5_kernel(x_ref, a1_ref, b1_ref, pw1_ref, a2_ref, b2_ref, pw2_ref,
                   a3_ref, b3_ref, w4_ref, b4_ref, w5_ref, b5_ref, out_ref):
    f32 = jnp.float32
    tb = x_ref.shape[0]

    x = x_ref[...].astype(f32)                                  # (tb, 32, 32)

    # conv1 (5x5, 1->6) + tanh: 5 banded MXU matmuls (one per kernel row).
    # Output layout: rows = (b, i), lanes = j*6 + c  ->  (tb*28, 168).
    acc = None
    for di in range(5):
        rows = x[:, di:di + 28, :].reshape(tb * 28, 32)
        t = jnp.dot(rows, a1_ref[di], preferred_element_type=f32)
        acc = t if acc is None else acc + t
    h = jnp.tanh(acc + b1_ref[...])                             # (tb*28, 168)

    # avgpool1 2x2: W-pool via matmul (0.25 folded into pw1), H-pool via
    # row-pair add.
    h = jnp.dot(h, pw1_ref[...], preferred_element_type=f32)    # (tb*28, 84)
    h = h.reshape(tb * 14, 2, 84)
    h = h[:, 0, :] + h[:, 1, :]                                 # (tb*14, 84)

    # conv2 (5x5, 6->16) + tanh, same banded-matmul scheme.
    h3 = h.reshape(tb, 14, 84)
    acc = None
    for di in range(5):
        rows = h3[:, di:di + 10, :].reshape(tb * 10, 84)
        t = jnp.dot(rows, a2_ref[di], preferred_element_type=f32)
        acc = t if acc is None else acc + t
    h = jnp.tanh(acc + b2_ref[...])                             # (tb*10, 160)

    # avgpool2 2x2.
    h = jnp.dot(h, pw2_ref[...], preferred_element_type=f32)    # (tb*10, 80)
    h = h.reshape(tb * 5, 2, 80)
    h = h[:, 0, :] + h[:, 1, :]                                 # (tb*5, 80)

    # conv3 (5x5, 16->120) + tanh: output spatial is 1x1, so this is five dense
    # (tb,80)@(80,120) matmuls -- the 400->120 "flatten + linear" without ever
    # moving sublanes into lanes.
    h3 = h.reshape(tb, 5, 80)
    acc = None
    for di in range(5):
        t = jnp.dot(h3[:, di, :], a3_ref[di], preferred_element_type=f32)
        acc = t if acc is None else acc + t
    h = jnp.tanh(acc + b3_ref[...])                             # (tb, 120)

    # classifier: fc1 + tanh, fc2 (columns zero-padded to a 128-lane multiple
    # on the host, so the store below is an unmasked full-width vst).
    h = jnp.tanh(jnp.dot(h, w4_ref[...], preferred_element_type=f32) + b4_ref[...])
    logits = jnp.dot(h, w5_ref[...], preferred_element_type=f32) + b5_ref[...]
    out_ref[...] = logits.astype(out_ref.dtype)                 # (tb, n_pad)


# ------------------------------- host wrapper --------------------------------

def _round_up(x, m):
    return (x + m - 1) // m * m


def _vmem_budget_and_cap():
    """(vmem_limit_bytes, max batch tile) derived from physical VMEM."""
    try:
        phys = getattr(pltpu.get_tpu_info(), "vmem_capacity_bytes", 64 << 20)
    except Exception:
        phys = 64 << 20
    if phys >= (96 << 20):          # v5e / v6e: 128 MiB physical VMEM
        return 80 << 20, 128
    return 48 << 20, 64             # v7x: 64 MiB physical VMEM


def _batch_tile(batch, cap):
    """8-aligned batch tile; >=2 grid steps when batch > 8 (v7x megacore)."""
    if batch <= 8:
        return batch
    return min(cap, _round_up((batch + 1) // 2, 8))


def lenet5_forward(params, x):
    """x: (B, 1, 32, 32) f32 NCHW -> (logits, probs), each (B, n_classes).

    `params` must be in kernel layout (see prepare_params)."""
    if x.shape[1] != 1 or x.shape[2] != 32 or x.shape[3] != 32:
        raise ValueError("LeNet-5 expects (B, 1, 32, 32) inputs")
    batch = x.shape[0]
    n_classes = params["w5"].shape[1]
    n_pad = max(128, _round_up(n_classes, 128))

    vmem_limit, cap = _vmem_budget_and_cap()
    tb = _batch_tile(batch, cap)
    padded = _round_up(batch, tb)
    grid = (padded // tb,)

    x2 = x.reshape(batch, 32, 32)                 # C == 1 -> pure reshape
    if padded != batch:
        x2 = jnp.pad(x2, ((0, padded - batch), (0, 0), (0, 0)))

    # zero-pad fc2 to a lane-dense (84, n_pad); padded logits columns are 0.
    w5p = jnp.pad(params["w5"], ((0, 0), (0, n_pad - n_classes)))
    b5p = jnp.pad(params["b5"], ((0, 0), (0, n_pad - n_classes)))

    def resident(a):
        # Full-size block, same block index every grid step -> DMA'd once and
        # kept resident in VMEM.
        return pl.BlockSpec(tuple(a.shape), lambda i, nd=a.ndim: (0,) * nd)

    weights = [params["a1"], params["b1"], params["pw1"],
               params["a2"], params["b2"], params["pw2"],
               params["a3"], params["b3"],
               params["w4"], params["b4"], w5p, b5p]

    in_specs = [pl.BlockSpec((tb, 32, 32), lambda i: (i, 0, 0))]
    in_specs += [resident(a) for a in weights]

    out = pl.pallas_call(
        _lenet5_kernel,
        grid=grid,
        in_specs=in_specs,
        out_specs=pl.BlockSpec((tb, n_pad), lambda i: (i, 0)),
        out_shape=jax.ShapeDtypeStruct((padded, n_pad), jnp.float32),
        compiler_params=pltpu.CompilerParams(
            dimension_semantics=("parallel",),     # megacore on v7x
            vmem_limit_bytes=vmem_limit,
        ),
    )(x2, *weights)

    logits = out[:batch, :n_classes]
    probs = jax.nn.softmax(logits, axis=-1)        # tiny (B, n) op in XLA
    return logits, probs


# ------------------------------- parameters ----------------------------------

def init_params(key, n_classes):
    """PyTorch-shaped LeNet-5 parameters (nn.Conv2d / nn.Linear default init)."""
    def uniform(k, shape, fan_in):
        bound = 1.0 / jnp.sqrt(jnp.float32(fan_in))
        return jax.random.uniform(k, shape, jnp.float32, -bound, bound)

    ks = jax.random.split(key, 10)
    return {
        "w1": uniform(ks[0], (6, 1, 5, 5), 25),
        "b1": uniform(ks[1], (6,), 25),
        "w2": uniform(ks[2], (16, 6, 5, 5), 150),
        "b2": uniform(ks[3], (16,), 150),
        "w3": uniform(ks[4], (120, 16, 5, 5), 400),
        "b3": uniform(ks[5], (120,), 400),
        "w4": uniform(ks[6], (84, 120), 120),
        "b4": uniform(ks[7], (84,), 120),
        "w5": uniform(ks[8], (n_classes, 84), 84),
        "b5": uniform(ks[9], (n_classes,), 84),
    }


def prepare_params(torch_params):
    """One-time host repack into the banded layouts the fused kernel consumes.

    a{1,2,3}[di] are the per-kernel-row banded matmul slabs, pw{1,2} are the
    W-direction avgpool matrices (0.25 folded in), biases are lane-broadcast
    rows, fc weights are transposed to (in, out)."""
    tp = {k: np.asarray(v, np.float32) for k, v in torch_params.items()}
    w1, b1 = tp["w1"], tp["b1"]            # (6,1,5,5), (6,)
    w2, b2 = tp["w2"], tp["b2"]            # (16,6,5,5), (16,)
    w3, b3 = tp["w3"], tp["b3"]            # (120,16,5,5), (120,)
    w4, b4 = tp["w4"], tp["b4"]            # (84,120), (84,)
    w5, b5 = tp["w5"], tp["b5"]            # (n,84), (n,)

    # conv1: out[(b,i), j*6+c] += x[b, i+di, j+dj] * w1[c,0,di,dj]
    a1 = np.zeros((5, 32, 28 * 6), np.float32)
    for di in range(5):
        for j in range(28):
            for dj in range(5):
                a1[di, j + dj, j * 6:(j + 1) * 6] = w1[:, 0, di, dj]
    b1r = np.tile(b1, 28).reshape(1, 168)

    # avgpool1 W-direction: lanes (j*6+c) -> ((j//2)*6+c), value 0.25
    pw1 = np.zeros((168, 84), np.float32)
    eye6 = 0.25 * np.eye(6, dtype=np.float32)
    for j in range(28):
        pw1[j * 6:(j + 1) * 6, (j // 2) * 6:(j // 2 + 1) * 6] = eye6

    # conv2: out[(b,i), j*16+c] += p1[b, i+di, j+dj, ci] * w2[c,ci,di,dj]
    a2 = np.zeros((5, 84, 10 * 16), np.float32)
    for di in range(5):
        for j in range(10):
            for dj in range(5):
                for ci in range(6):
                    a2[di, (j + dj) * 6 + ci, j * 16:(j + 1) * 16] = w2[:, ci, di, dj]
    b2r = np.tile(b2, 10).reshape(1, 160)

    # avgpool2 W-direction
    pw2 = np.zeros((160, 80), np.float32)
    eye16 = 0.25 * np.eye(16, dtype=np.float32)
    for j in range(10):
        pw2[j * 16:(j + 1) * 16, (j // 2) * 16:(j // 2 + 1) * 16] = eye16

    # conv3 (1x1 output): out[b, c] += p2[b, di, x, ci] * w3[c, ci, di, x]
    a3 = np.zeros((5, 80, 120), np.float32)
    for di in range(5):
        for xx in range(5):
            for ci in range(16):
                a3[di, xx * 16 + ci, :] = w3[:, ci, di, xx]
    b3r = b3.reshape(1, 120)

    return {
        "a1": jnp.asarray(a1), "b1": jnp.asarray(b1r), "pw1": jnp.asarray(pw1),
        "a2": jnp.asarray(a2), "b2": jnp.asarray(b2r), "pw2": jnp.asarray(pw2),
        "a3": jnp.asarray(a3), "b3": jnp.asarray(b3r),
        "w4": jnp.asarray(np.ascontiguousarray(w4.T)),
        "b4": jnp.asarray(b4.reshape(1, 84)),
        "w5": jnp.asarray(np.ascontiguousarray(w5.T)),
        "b5": jnp.asarray(b5.reshape(1, -1)),
    }


# ------------------------------ pure-JAX reference ---------------------------

def lenet5_reference(torch_params, x):
    """Plain-XLA reference with PyTorch semantics (for validation)."""
    p = torch_params
    dn = ("NCHW", "OIHW", "NCHW")

    def conv(x, w, b):
        y = jax.lax.conv_general_dilated(x, w, (1, 1), "VALID", dimension_numbers=dn)
        return jnp.tanh(y + b[None, :, None, None])

    def pool(x):
        b, c, h, w = x.shape
        return x.reshape(b, c, h // 2, 2, w // 2, 2).mean(axis=(3, 5))

    x = pool(conv(x, p["w1"], p["b1"]))
    x = pool(conv(x, p["w2"], p["b2"]))
    x = conv(x, p["w3"], p["b3"]).reshape(x.shape[0], 120)
    x = jnp.tanh(x @ p["w4"].T + p["b4"])
    logits = x @ p["w5"].T + p["b5"]
    return logits, jax.nn.softmax(logits, axis=-1)


# ----------------------------------- main -------------------------------------

if __name__ == "__main__":
    n_classes = 10
    key = jax.random.PRNGKey(0)
    k_x, k_p = jax.random.split(key)

    torch_params = init_params(k_p, n_classes)
    params = prepare_params(torch_params)
    fwd = jax.jit(lenet5_forward)

    # Canonical LeNet-5 input: 32x32 single-channel NCHW, small batch.
    x = jax.random.normal(k_x, (2, 1, 32, 32), dtype=jnp.float32)
    logits, probs = fwd(params, x)
    jax.block_until_ready((logits, probs))

    assert logits.shape == (2, n_classes) and probs.shape == (2, n_classes)
    assert bool(jnp.all(jnp.isfinite(logits))) and bool(jnp.all(jnp.isfinite(probs)))
    assert bool(jnp.all(jnp.abs(jnp.sum(probs, axis=1) - 1.0) < 1e-5))
    ref_logits, ref_probs = lenet5_reference(torch_params, x)
    assert float(jnp.max(jnp.abs(logits - ref_logits))) < 5e-3
    assert float(jnp.max(jnp.abs(probs - ref_probs))) < 5e-3

    # Non-multiple-of-tile batch: exercises batch padding + a 2-step grid.
    x2 = jax.random.normal(k_x, (19, 1, 32, 32), dtype=jnp.float32)
    logits2, probs2 = fwd(params, x2)
    jax.block_until_ready((logits2, probs2))
    assert logits2.shape == (19, n_classes)
    ref_logits2, _ = lenet5_reference(torch_params, x2)
    assert float(jnp.max(jnp.abs(logits2 - ref_logits2))) < 5e-3

    print("KERNEL_OK")
</pallas_src>

<mosaic_0001>
module attributes {stable_mosaic.version = 11 : i64} {
  func.func @_lenet5_kernel(%arg0: i32, %arg1: memref<2x32x32xf32, #tpu.memory_space<vmem>>, %arg2: memref<5x32x168xf32, #tpu.memory_space<vmem>>, %arg3: memref<1x168xf32, #tpu.memory_space<vmem>>, %arg4: memref<168x84xf32, #tpu.memory_space<vmem>>, %arg5: memref<5x84x160xf32, #tpu.memory_space<vmem>>, %arg6: memref<1x160xf32, #tpu.memory_space<vmem>>, %arg7: memref<160x80xf32, #tpu.memory_space<vmem>>, %arg8: memref<5x80x120xf32, #tpu.memory_space<vmem>>, %arg9: memref<1x120xf32, #tpu.memory_space<vmem>>, %arg10: memref<120x84xf32, #tpu.memory_space<vmem>>, %arg11: memref<1x84xf32, #tpu.memory_space<vmem>>, %arg12: memref<84x128xf32, #tpu.memory_space<vmem>>, %arg13: memref<1x128xf32, #tpu.memory_space<vmem>>, %arg14: memref<2x128xf32, #tpu.memory_space<vmem>>) attributes {dimension_semantics = [#tpu.dimension_semantics<parallel>], iteration_bounds = array<i64: 1>, scalar_prefetch = 0 : i64, scratch_operands = 0 : i64, tpu.core_type = #tpu.core_type<tc>, window_params = [{transform_indices = @transform_0, window_bounds = array<i64: 2, 32, 32>}, {pipeline_mode = #tpu.pipeline_mode<synchronous>, transform_indices = @transform_1, window_bounds = array<i64: 5, 32, 168>}, {pipeline_mode = #tpu.pipeline_mode<synchronous>, transform_indices = @transform_2, window_bounds = array<i64: 1, 168>}, {pipeline_mode = #tpu.pipeline_mode<synchronous>, transform_indices = @transform_3, window_bounds = array<i64: 168, 84>}, {pipeline_mode = #tpu.pipeline_mode<synchronous>, transform_indices = @transform_4, window_bounds = array<i64: 5, 84, 160>}, {pipeline_mode = #tpu.pipeline_mode<synchronous>, transform_indices = @transform_5, window_bounds = array<i64: 1, 160>}, {pipeline_mode = #tpu.pipeline_mode<synchronous>, transform_indices = @transform_6, window_bounds = array<i64: 160, 80>}, {pipeline_mode = #tpu.pipeline_mode<synchronous>, transform_indices = @transform_7, window_bounds = array<i64: 5, 80, 120>}, {pipeline_mode = #tpu.pipeline_mode<synchronous>, transform_indices = @transform_8, window_bounds = array<i64: 1, 120>}, {pipeline_mode = #tpu.pipeline_mode<synchronous>, transform_indices = @transform_9, window_bounds = array<i64: 120, 84>}, {pipeline_mode = #tpu.pipeline_mode<synchronous>, transform_indices = @transform_10, window_bounds = array<i64: 1, 84>}, {pipeline_mode = #tpu.pipeline_mode<synchronous>, transform_indices = @transform_11, window_bounds = array<i64: 84, 128>}, {pipeline_mode = #tpu.pipeline_mode<synchronous>, transform_indices = @transform_12, window_bounds = array<i64: 1, 128>}, {transform_indices = @transform_13, window_bounds = array<i64: 2, 128>}]} {
    %c0 = arith.constant 0 : index
    %c0_0 = arith.constant 0 : index
    %c0_1 = arith.constant 0 : index
    %0 = vector.load %arg1[%c0, %c0_0, %c0_1] : memref<2x32x32xf32, #tpu.memory_space<vmem>>, vector<2x32x32xf32>
    %1 = vector.extract_strided_slice %0 {offsets = [0, 0, 0], sizes = [2, 28, 32], strides = [1, 1, 1]} : vector<2x32x32xf32> to vector<2x28x32xf32>
    %2 = vector.shape_cast %1 : vector<2x28x32xf32> to vector<56x32xf32>
    %c0_2 = arith.constant 0 : index
    %c0_3 = arith.constant 0 : index
    %c0_4 = arith.constant 0 : index
    %3 = vector.load %arg2[%c0_2, %c0_3, %c0_4] : memref<5x32x168xf32, #tpu.memory_space<vmem>>, vector<1x32x168xf32>
    %4 = vector.shape_cast %3 : vector<1x32x168xf32> to vector<32x168xf32>
    %cst = arith.constant dense<0.000000e+00> : vector<56x168xf32>
    %5 = tpu.matmul %2, %4, %cst {dimension_numbers = #tpu.dot_dimension_numbers<[1], [0], [0], [1], [0, 0, 1, 1], [], []>} : vector<56x32xf32>, vector<32x168xf32>, vector<56x168xf32> -> vector<56x168xf32>
    %6 = vector.extract_strided_slice %0 {offsets = [0, 1, 0], sizes = [2, 28, 32], strides = [1, 1, 1]} : vector<2x32x32xf32> to vector<2x28x32xf32>
    %7 = vector.shape_cast %6 : vector<2x28x32xf32> to vector<56x32xf32>
    %c1 = arith.constant 1 : index
    %c0_5 = arith.constant 0 : index
    %c0_6 = arith.constant 0 : index
    %8 = vector.load %arg2[%c1, %c0_5, %c0_6] : memref<5x32x168xf32, #tpu.memory_space<vmem>>, vector<1x32x168xf32>
    %9 = vector.shape_cast %8 : vector<1x32x168xf32> to vector<32x168xf32>
    %cst_7 = arith.constant dense<0.000000e+00> : vector<56x168xf32>
    %10 = tpu.matmul %7, %9, %cst_7 {dimension_numbers = #tpu.dot_dimension_numbers<[1], [0], [0], [1], [0, 0, 1, 1], [], []>} : vector<56x32xf32>, vector<32x168xf32>, vector<56x168xf32> -> vector<56x168xf32>
    %11 = arith.addf %5, %10 : vector<56x168xf32>
    %12 = vector.extract_strided_slice %0 {offsets = [0, 2, 0], sizes = [2, 28, 32], strides = [1, 1, 1]} : vector<2x32x32xf32> to vector<2x28x32xf32>
    %13 = vector.shape_cast %12 : vector<2x28x32xf32> to vector<56x32xf32>
    %c2 = arith.constant 2 : index
    %c0_8 = arith.constant 0 : index
    %c0_9 = arith.constant 0 : index
    %14 = vector.load %arg2[%c2, %c0_8, %c0_9] : memref<5x32x168xf32, #tpu.memory_space<vmem>>, vector<1x32x168xf32>
    %15 = vector.shape_cast %14 : vector<1x32x168xf32> to vector<32x168xf32>
    %cst_10 = arith.constant dense<0.000000e+00> : vector<56x168xf32>
    %16 = tpu.matmul %13, %15, %cst_10 {dimension_numbers = #tpu.dot_dimension_numbers<[1], [0], [0], [1], [0, 0, 1, 1], [], []>} : vector<56x32xf32>, vector<32x168xf32>, vector<56x168xf32> -> vector<56x168xf32>
    %17 = arith.addf %11, %16 : vector<56x168xf32>
    %18 = vector.extract_strided_slice %0 {offsets = [0, 3, 0], sizes = [2, 28, 32], strides = [1, 1, 1]} : vector<2x32x32xf32> to vector<2x28x32xf32>
    %19 = vector.shape_cast %18 : vector<2x28x32xf32> to vector<56x32xf32>
    %c3 = arith.constant 3 : index
    %c0_11 = arith.constant 0 : index
    %c0_12 = arith.constant 0 : index
    %20 = vector.load %arg2[%c3, %c0_11, %c0_12] : memref<5x32x168xf32, #tpu.memory_space<vmem>>, vector<1x32x168xf32>
    %21 = vector.shape_cast %20 : vector<1x32x168xf32> to vector<32x168xf32>
    %cst_13 = arith.constant dense<0.000000e+00> : vector<56x168xf32>
    %22 = tpu.matmul %19, %21, %cst_13 {dimension_numbers = #tpu.dot_dimension_numbers<[1], [0], [0], [1], [0, 0, 1, 1], [], []>} : vector<56x32xf32>, vector<32x168xf32>, vector<56x168xf32> -> vector<56x168xf32>
    %23 = arith.addf %17, %22 : vector<56x168xf32>
    %24 = vector.extract_strided_slice %0 {offsets = [0, 4, 0], sizes = [2, 28, 32], strides = [1, 1, 1]} : vector<2x32x32xf32> to vector<2x28x32xf32>
    %25 = vector.shape_cast %24 : vector<2x28x32xf32> to vector<56x32xf32>
    %c4 = arith.constant 4 : index
    %c0_14 = arith.constant 0 : index
    %c0_15 = arith.constant 0 : index
    %26 = vector.load %arg2[%c4, %c0_14, %c0_15] : memref<5x32x168xf32, #tpu.memory_space<vmem>>, vector<1x32x168xf32>
    %27 = vector.shape_cast %26 : vector<1x32x168xf32> to vector<32x168xf32>
    %cst_16 = arith.constant dense<0.000000e+00> : vector<56x168xf32>
    %28 = tpu.matmul %25, %27, %cst_16 {dimension_numbers = #tpu.dot_dimension_numbers<[1], [0], [0], [1], [0, 0, 1, 1], [], []>} : vector<56x32xf32>, vector<32x168xf32>, vector<56x168xf32> -> vector<56x168xf32>
    %29 = arith.addf %23, %28 : vector<56x168xf32>
    %c0_17 = arith.constant 0 : index
    %c0_18 = arith.constant 0 : index
    %30 = vector.load %arg3[%c0_17, %c0_18] : memref<1x168xf32, #tpu.memory_space<vmem>>, vector<1x168xf32>
    %31 = vector.broadcast %30 : vector<1x168xf32> to vector<56x168xf32>
    %32 = arith.addf %29, %31 : vector<56x168xf32>
    %33 = math.tanh %32 : vector<56x168xf32>
    %c0_19 = arith.constant 0 : index
    %c0_20 = arith.constant 0 : index
    %34 = vector.load %arg4[%c0_19, %c0_20] : memref<168x84xf32, #tpu.memory_space<vmem>>, vector<168x84xf32>
    %cst_21 = arith.constant dense<0.000000e+00> : vector<56x84xf32>
    %35 = tpu.matmul %33, %34, %cst_21 {dimension_numbers = #tpu.dot_dimension_numbers<[1], [0], [0], [1], [0, 0, 1, 1], [], []>} : vector<56x168xf32>, vector<168x84xf32>, vector<56x84xf32> -> vector<56x84xf32>
    %36 = vector.shape_cast %35 : vector<56x84xf32> to vector<28x2x84xf32>
    %37 = vector.extract_strided_slice %36 {offsets = [0, 0, 0], sizes = [28, 1, 84], strides = [1, 1, 1]} : vector<28x2x84xf32> to vector<28x1x84xf32>
    %38 = vector.shape_cast %37 : vector<28x1x84xf32> to vector<28x84xf32>
    %39 = vector.extract_strided_slice %36 {offsets = [0, 1, 0], sizes = [28, 1, 84], strides = [1, 1, 1]} : vector<28x2x84xf32> to vector<28x1x84xf32>
    %40 = vector.shape_cast %39 : vector<28x1x84xf32> to vector<28x84xf32>
    %41 = arith.addf %38, %40 : vector<28x84xf32>
    %42 = vector.shape_cast %41 : vector<28x84xf32> to vector<2x14x84xf32>
    %43 = vector.extract_strided_slice %42 {offsets = [0, 0, 0], sizes = [2, 10, 84], strides = [1, 1, 1]} : vector<2x14x84xf32> to vector<2x10x84xf32>
    %44 = vector.shape_cast %43 : vector<2x10x84xf32> to vector<20x84xf32>
    %c0_22 = arith.constant 0 : index
    %c0_23 = arith.constant 0 : index
    %c0_24 = arith.constant 0 : index
    %45 = vector.load %arg5[%c0_22, %c0_23, %c0_24] : memref<5x84x160xf32, #tpu.memory_space<vmem>>, vector<1x84x160xf32>
    %46 = vector.shape_cast %45 : vector<1x84x160xf32> to vector<84x160xf32>
    %cst_25 = arith.constant dense<0.000000e+00> : vector<20x160xf32>
    %47 = tpu.matmul %44, %46, %cst_25 {dimension_numbers = #tpu.dot_dimension_numbers<[1], [0], [0], [1], [0, 0, 1, 1], [], []>} : vector<20x84xf32>, vector<84x160xf32>, vector<20x160xf32> -> vector<20x160xf32>
    %48 = vector.extract_strided_slice %42 {offsets = [0, 1, 0], sizes = [2, 10, 84], strides = [1, 1, 1]} : vector<2x14x84xf32> to vector<2x10x84xf32>
    %49 = vector.shape_cast %48 : vector<2x10x84xf32> to vector<20x84xf32>
    %c1_26 = arith.constant 1 : index
    %c0_27 = arith.constant 0 : index
    %c0_28 = arith.constant 0 : index
    %50 = vector.load %arg5[%c1_26, %c0_27, %c0_28] : memref<5x84x160xf32, #tpu.memory_space<vmem>>, vector<1x84x160xf32>
    %51 = vector.shape_cast %50 : vector<1x84x160xf32> to vector<84x160xf32>
    %cst_29 = arith.constant dense<0.000000e+00> : vector<20x160xf32>
    %52 = tpu.matmul %49, %51, %cst_29 {dimension_numbers = #tpu.dot_dimension_numbers<[1], [0], [0], [1], [0, 0, 1, 1], [], []>} : vector<20x84xf32>, vector<84x160xf32>, vector<20x160xf32> -> vector<20x160xf32>
    %53 = arith.addf %47, %52 : vector<20x160xf32>
    %54 = vector.extract_strided_slice %42 {offsets = [0, 2, 0], sizes = [2, 10, 84], strides = [1, 1, 1]} : vector<2x14x84xf32> to vector<2x10x84xf32>
    %55 = vector.shape_cast %54 : vector<2x10x84xf32> to vector<20x84xf32>
    %c2_30 = arith.constant 2 : index
    %c0_31 = arith.constant 0 : index
    %c0_32 = arith.constant 0 : index
    %56 = vector.load %arg5[%c2_30, %c0_31, %c0_32] : memref<5x84x160xf32, #tpu.memory_space<vmem>>, vector<1x84x160xf32>
    %57 = vector.shape_cast %56 : vector<1x84x160xf32> to vector<84x160xf32>
    %cst_33 = arith.constant dense<0.000000e+00> : vector<20x160xf32>
    %58 = tpu.matmul %55, %57, %cst_33 {dimension_numbers = #tpu.dot_dimension_numbers<[1], [0], [0], [1], [0, 0, 1, 1], [], []>} : vector<20x84xf32>, vector<84x160xf32>, vector<20x160xf32> -> vector<20x160xf32>
    %59 = arith.addf %53, %58 : vector<20x160xf32>
    %60 = vector.extract_strided_slice %42 {offsets = [0, 3, 0], sizes = [2, 10, 84], strides = [1, 1, 1]} : vector<2x14x84xf32> to vector<2x10x84xf32>
    %61 = vector.shape_cast %60 : vector<2x10x84xf32> to vector<20x84xf32>
    %c3_34 = arith.constant 3 : index
    %c0_35 = arith.constant 0 : index
    %c0_36 = arith.constant 0 : index
    %62 = vector.load %arg5[%c3_34, %c0_35, %c0_36] : memref<5x84x160xf32, #tpu.memory_space<vmem>>, vector<1x84x160xf32>
    %63 = vector.shape_cast %62 : vector<1x84x160xf32> to vector<84x160xf32>
    %cst_37 = arith.constant dense<0.000000e+00> : vector<20x160xf32>
    %64 = tpu.matmul %61, %63, %cst_37 {dimension_numbers = #tpu.dot_dimension_numbers<[1], [0], [0], [1], [0, 0, 1, 1], [], []>} : vector<20x84xf32>, vector<84x160xf32>, vector<20x160xf32> -> vector<20x160xf32>
    %65 = arith.addf %59, %64 : vector<20x160xf32>
    %66 = vector.extract_strided_slice %42 {offsets = [0, 4, 0], sizes = [2, 10, 84], strides = [1, 1, 1]} : vector<2x14x84xf32> to vector<2x10x84xf32>
    %67 = vector.shape_cast %66 : vector<2x10x84xf32> to vector<20x84xf32>
    %c4_38 = arith.constant 4 : index
    %c0_39 = arith.constant 0 : index
    %c0_40 = arith.constant 0 : index
    %68 = vector.load %arg5[%c4_38, %c0_39, %c0_40] : memref<5x84x160xf32, #tpu.memory_space<vmem>>, vector<1x84x160xf32>
    %69 = vector.shape_cast %68 : vector<1x84x160xf32> to vector<84x160xf32>
    %cst_41 = arith.constant dense<0.000000e+00> : vector<20x160xf32>
    %70 = tpu.matmul %67, %69, %cst_41 {dimension_numbers = #tpu.dot_dimension_numbers<[1], [0], [0], [1], [0, 0, 1, 1], [], []>} : vector<20x84xf32>, vector<84x160xf32>, vector<20x160xf32> -> vector<20x160xf32>
    %71 = arith.addf %65, %70 : vector<20x160xf32>
    %c0_42 = arith.constant 0 : index
    %c0_43 = arith.constant 0 : index
    %72 = vector.load %arg6[%c0_42, %c0_43] : memref<1x160xf32, #tpu.memory_space<vmem>>, vector<1x160xf32>
    %73 = vector.broadcast %72 : vector<1x160xf32> to vector<20x160xf32>
    %74 = arith.addf %71, %73 : vector<20x160xf32>
    %75 = math.tanh %74 : vector<20x160xf32>
    %c0_44 = arith.constant 0 : index
    %c0_45 = arith.constant 0 : index
    %76 = vector.load %arg7[%c0_44, %c0_45] : memref<160x80xf32, #tpu.memory_space<vmem>>, vector<160x80xf32>
    %cst_46 = arith.constant dense<0.000000e+00> : vector<20x80xf32>
    %77 = tpu.matmul %75, %76, %cst_46 {dimension_numbers = #tpu.dot_dimension_numbers<[1], [0], [0], [1], [0, 0, 1, 1], [], []>} : vector<20x160xf32>, vector<160x80xf32>, vector<20x80xf32> -> vector<20x80xf32>
    %78 = vector.shape_cast %77 : vector<20x80xf32> to vector<10x2x80xf32>
    %79 = vector.extract_strided_slice %78 {offsets = [0, 0, 0], sizes = [10, 1, 80], strides = [1, 1, 1]} : vector<10x2x80xf32> to vector<10x1x80xf32>
    %80 = vector.shape_cast %79 : vector<10x1x80xf32> to vector<10x80xf32>
    %81 = vector.extract_strided_slice %78 {offsets = [0, 1, 0], sizes = [10, 1, 80], strides = [1, 1, 1]} : vector<10x2x80xf32> to vector<10x1x80xf32>
    %82 = vector.shape_cast %81 : vector<10x1x80xf32> to vector<10x80xf32>
    %83 = arith.addf %80, %82 : vector<10x80xf32>
    %84 = vector.shape_cast %83 : vector<10x80xf32> to vector<2x5x80xf32>
    %85 = vector.extract_strided_slice %84 {offsets = [0, 0, 0], sizes = [2, 1, 80], strides = [1, 1, 1]} : vector<2x5x80xf32> to vector<2x1x80xf32>
    %86 = vector.shape_cast %85 : vector<2x1x80xf32> to vector<2x80xf32>
    %c0_47 = arith.constant 0 : index
    %c0_48 = arith.constant 0 : index
    %c0_49 = arith.constant 0 : index
    %87 = vector.load %arg8[%c0_47, %c0_48, %c0_49] : memref<5x80x120xf32, #tpu.memory_space<vmem>>, vector<1x80x120xf32>
    %88 = vector.shape_cast %87 : vector<1x80x120xf32> to vector<80x120xf32>
    %cst_50 = arith.constant dense<0.000000e+00> : vector<2x120xf32>
    %89 = tpu.matmul %86, %88, %cst_50 {dimension_numbers = #tpu.dot_dimension_numbers<[1], [0], [0], [1], [0, 0, 1, 1], [], []>} : vector<2x80xf32>, vector<80x120xf32>, vector<2x120xf32> -> vector<2x120xf32>
    %90 = vector.extract_strided_slice %84 {offsets = [0, 1, 0], sizes = [2, 1, 80], strides = [1, 1, 1]} : vector<2x5x80xf32> to vector<2x1x80xf32>
    %91 = vector.shape_cast %90 : vector<2x1x80xf32> to vector<2x80xf32>
    %c1_51 = arith.constant 1 : index
    %c0_52 = arith.constant 0 : index
    %c0_53 = arith.constant 0 : index
    %92 = vector.load %arg8[%c1_51, %c0_52, %c0_53] : memref<5x80x120xf32, #tpu.memory_space<vmem>>, vector<1x80x120xf32>
    %93 = vector.shape_cast %92 : vector<1x80x120xf32> to vector<80x120xf32>
    %cst_54 = arith.constant dense<0.000000e+00> : vector<2x120xf32>
    %94 = tpu.matmul %91, %93, %cst_54 {dimension_numbers = #tpu.dot_dimension_numbers<[1], [0], [0], [1], [0, 0, 1, 1], [], []>} : vector<2x80xf32>, vector<80x120xf32>, vector<2x120xf32> -> vector<2x120xf32>
    %95 = arith.addf %89, %94 : vector<2x120xf32>
    %96 = vector.extract_strided_slice %84 {offsets = [0, 2, 0], sizes = [2, 1, 80], strides = [1, 1, 1]} : vector<2x5x80xf32> to vector<2x1x80xf32>
    %97 = vector.shape_cast %96 : vector<2x1x80xf32> to vector<2x80xf32>
    %c2_55 = arith.constant 2 : index
    %c0_56 = arith.constant 0 : index
    %c0_57 = arith.constant 0 : index
    %98 = vector.load %arg8[%c2_55, %c0_56, %c0_57] : memref<5x80x120xf32, #tpu.memory_space<vmem>>, vector<1x80x120xf32>
    %99 = vector.shape_cast %98 : vector<1x80x120xf32> to vector<80x120xf32>
    %cst_58 = arith.constant dense<0.000000e+00> : vector<2x120xf32>
    %100 = tpu.matmul %97, %99, %cst_58 {dimension_numbers = #tpu.dot_dimension_numbers<[1], [0], [0], [1], [0, 0, 1, 1], [], []>} : vector<2x80xf32>, vector<80x120xf32>, vector<2x120xf32> -> vector<2x120xf32>
    %101 = arith.addf %95, %100 : vector<2x120xf32>
    %102 = vector.extract_strided_slice %84 {offsets = [0, 3, 0], sizes = [2, 1, 80], strides = [1, 1, 1]} : vector<2x5x80xf32> to vector<2x1x80xf32>
    %103 = vector.shape_cast %102 : vector<2x1x80xf32> to vector<2x80xf32>
    %c3_59 = arith.constant 3 : index
    %c0_60 = arith.constant 0 : index
    %c0_61 = arith.constant 0 : index
    %104 = vector.load %arg8[%c3_59, %c0_60, %c0_61] : memref<5x80x120xf32, #tpu.memory_space<vmem>>, vector<1x80x120xf32>
    %105 = vector.shape_cast %104 : vector<1x80x120xf32> to vector<80x120xf32>
    %cst_62 = arith.constant dense<0.000000e+00> : vector<2x120xf32>
    %106 = tpu.matmul %103, %105, %cst_62 {dimension_numbers = #tpu.dot_dimension_numbers<[1], [0], [0], [1], [0, 0, 1, 1], [], []>} : vector<2x80xf32>, vector<80x120xf32>, vector<2x120xf32> -> vector<2x120xf32>
    %107 = arith.addf %101, %106 : vector<2x120xf32>
    %108 = vector.extract_strided_slice %84 {offsets = [0, 4, 0], sizes = [2, 1, 80], strides = [1, 1, 1]} : vector<2x5x80xf32> to vector<2x1x80xf32>
    %109 = vector.shape_cast %108 : vector<2x1x80xf32> to vector<2x80xf32>
    %c4_63 = arith.constant 4 : index
    %c0_64 = arith.constant 0 : index
    %c0_65 = arith.constant 0 : index
    %110 = vector.load %arg8[%c4_63, %c0_64, %c0_65] : memref<5x80x120xf32, #tpu.memory_space<vmem>>, vector<1x80x120xf32>
    %111 = vector.shape_cast %110 : vector<1x80x120xf32> to vector<80x120xf32>
    %cst_66 = arith.constant dense<0.000000e+00> : vector<2x120xf32>
    %112 = tpu.matmul %109, %111, %cst_66 {dimension_numbers = #tpu.dot_dimension_numbers<[1], [0], [0], [1], [0, 0, 1, 1], [], []>} : vector<2x80xf32>, vector<80x120xf32>, vector<2x120xf32> -> vector<2x120xf32>
    %113 = arith.addf %107, %112 : vector<2x120xf32>
    %c0_67 = arith.constant 0 : index
    %c0_68 = arith.constant 0 : index
    %114 = vector.load %arg9[%c0_67, %c0_68] : memref<1x120xf32, #tpu.memory_space<vmem>>, vector<1x120xf32>
    %115 = vector.broadcast %114 : vector<1x120xf32> to vector<2x120xf32>
    %116 = arith.addf %113, %115 : vector<2x120xf32>
    %117 = math.tanh %116 : vector<2x120xf32>
    %c0_69 = arith.constant 0 : index
    %c0_70 = arith.constant 0 : index
    %118 = vector.load %arg10[%c0_69, %c0_70] : memref<120x84xf32, #tpu.memory_space<vmem>>, vector<120x84xf32>
    %cst_71 = arith.constant dense<0.000000e+00> : vector<2x84xf32>
    %119 = tpu.matmul %117, %118, %cst_71 {dimension_numbers = #tpu.dot_dimension_numbers<[1], [0], [0], [1], [0, 0, 1, 1], [], []>} : vector<2x120xf32>, vector<120x84xf32>, vector<2x84xf32> -> vector<2x84xf32>
    %c0_72 = arith.constant 0 : index
    %c0_73 = arith.constant 0 : index
    %120 = vector.load %arg11[%c0_72, %c0_73] : memref<1x84xf32, #tpu.memory_space<vmem>>, vector<1x84xf32>
    %121 = vector.broadcast %120 : vector<1x84xf32> to vector<2x84xf32>
    %122 = arith.addf %119, %121 : vector<2x84xf32>
    %123 = math.tanh %122 : vector<2x84xf32>
    %c0_74 = arith.constant 0 : index
    %c0_75 = arith.constant 0 : index
    %124 = vector.load %arg12[%c0_74, %c0_75] : memref<84x128xf32, #tpu.memory_space<vmem>>, vector<84x128xf32>
    %cst_76 = arith.constant dense<0.000000e+00> : vector<2x128xf32>
    %125 = tpu.matmul %123, %124, %cst_76 {dimension_numbers = #tpu.dot_dimension_numbers<[1], [0], [0], [1], [0, 0, 1, 1], [], []>} : vector<2x84xf32>, vector<84x128xf32>, vector<2x128xf32> -> vector<2x128xf32>
    %c0_77 = arith.constant 0 : index
    %c0_78 = arith.constant 0 : index
    %126 = vector.load %arg13[%c0_77, %c0_78] : memref<1x128xf32, #tpu.memory_space<vmem>>, vector<1x128xf32>
    %127 = vector.broadcast %126 : vector<1x128xf32> to vector<2x128xf32>
    %128 = arith.addf %125, %127 : vector<2x128xf32>
    %c0_79 = arith.constant 0 : index
    %c0_80 = arith.constant 0 : index
    %129 = vector.load %arg14[%c0_79, %c0_80] : memref<2x128xf32, #tpu.memory_space<vmem>>, vector<2x128xf32>
    tpu.vector_store %arg14[%c0_79, %c0_80], %128 {strides = array<i32>} : memref<2x128xf32, #tpu.memory_space<vmem>>, vector<2x128xf32>,
    return
  }
  func.func @transform_0(%arg0: i32) -> (i32, i32, i32) {
    %c0_i32 = arith.constant 0 : i32
    %c0_i32_0 = arith.constant 0 : i32
    %c0_i32_1 = arith.constant 0 : i32
    return %arg0, %c0_i32, %c0_i32_0 : i32, i32, i32
  }
  func.func @transform_1(%arg0: i32) -> (i32, i32, i32) {
    %c0_i32 = arith.constant 0 : i32
    %c0_i32_0 = arith.constant 0 : i32
    %c0_i32_1 = arith.constant 0 : i32
    %c0_i32_2 = arith.constant 0 : i32
    return %c0_i32, %c0_i32_0, %c0_i32_1 : i32, i32, i32
  }
  func.func @transform_2(%arg0: i32) -> (i32, i32) {
    %c0_i32 = arith.constant 0 : i32
    %c0_i32_0 = arith.constant 0 : i32
    %c0_i32_1 = arith.constant 0 : i32
    return %c0_i32, %c0_i32_0 : i32, i32
  }
  func.func @transform_3(%arg0: i32) -> (i32, i32) {
    %c0_i32 = arith.constant 0 : i32
    %c0_i32_0 = arith.constant 0 : i32
    %c0_i32_1 = arith.constant 0 : i32
    return %c0_i32, %c0_i32_0 : i32, i32
  }
  func.func @transform_4(%arg0: i32) -> (i32, i32, i32) {
    %c0_i32 = arith.constant 0 : i32
    %c0_i32_0 = arith.constant 0 : i32
    %c0_i32_1 = arith.constant 0 : i32
    %c0_i32_2 = arith.constant 0 : i32
    return %c0_i32, %c0_i32_0, %c0_i32_1 : i32, i32, i32
  }
  func.func @transform_5(%arg0: i32) -> (i32, i32) {
    %c0_i32 = arith.constant 0 : i32
    %c0_i32_0 = arith.constant 0 : i32
    %c0_i32_1 = arith.constant 0 : i32
    return %c0_i32, %c0_i32_0 : i32, i32
  }
  func.func @transform_6(%arg0: i32) -> (i32, i32) {
    %c0_i32 = arith.constant 0 : i32
    %c0_i32_0 = arith.constant 0 : i32
    %c0_i32_1 = arith.constant 0 : i32
    return %c0_i32, %c0_i32_0 : i32, i32
  }
  func.func @transform_7(%arg0: i32) -> (i32, i32, i32) {
    %c0_i32 = arith.constant 0 : i32
    %c0_i32_0 = arith.constant 0 : i32
    %c0_i32_1 = arith.constant 0 : i32
    %c0_i32_2 = arith.constant 0 : i32
    return %c0_i32, %c0_i32_0, %c0_i32_1 : i32, i32, i32
  }
  func.func @transform_8(%arg0: i32) -> (i32, i32) {
    %c0_i32 = arith.constant 0 : i32
    %c0_i32_0 = arith.constant 0 : i32
    %c0_i32_1 = arith.constant 0 : i32
    return %c0_i32, %c0_i32_0 : i32, i32
  }
  func.func @transform_9(%arg0: i32) -> (i32, i32) {
    %c0_i32 = arith.constant 0 : i32
    %c0_i32_0 = arith.constant 0 : i32
    %c0_i32_1 = arith.constant 0 : i32
    return %c0_i32, %c0_i32_0 : i32, i32
  }
  func.func @transform_10(%arg0: i32) -> (i32, i32) {
    %c0_i32 = arith.constant 0 : i32
    %c0_i32_0 = arith.constant 0 : i32
    %c0_i32_1 = arith.constant 0 : i32
    return %c0_i32, %c0_i32_0 : i32, i32
  }
  func.func @transform_11(%arg0: i32) -> (i32, i32) {
    %c0_i32 = arith.constant 0 : i32
    %c0_i32_0 = arith.constant 0 : i32
    %c0_i32_1 = arith.constant 0 : i32
    return %c0_i32, %c0_i32_0 : i32, i32
  }
  func.func @transform_12(%arg0: i32) -> (i32, i32) {
    %c0_i32 = arith.constant 0 : i32
    %c0_i32_0 = arith.constant 0 : i32
    %c0_i32_1 = arith.constant 0 : i32
    return %c0_i32, %c0_i32_0 : i32, i32
  }
  func.func @transform_13(%arg0: i32) -> (i32, i32) {
    %c0_i32 = arith.constant 0 : i32
    %c0_i32_0 = arith.constant 0 : i32
    return %arg0, %c0_i32 : i32, i32
  }
}

</mosaic_0001>

<bundles_post_ra>
// kernel: lenet5_forward.1
= control target key start
LH: loop header
LB: loop body
LE: loop exit
PB: predicated region body
PF: predicated region fallthrough
CT: control target
= control target key end

     0   :  { %vm76_vm0 = vcmask 1042432   ;;  %vm77_vm1 = vcmask 1046532   ;;  %vm160_vm3 = vcmask 261120   ;;  %vm369_vm4 = vcmask 1041408   ;;  %s4374_s1 = inlined_call_operand.vmem [shape: f32[5,32,168], index: 1, kind: input, shape index: {}]   ;;  %s4375_s0 = inlined_call_operand.vmem [shape: f32[2,32,32], index: 0, kind: input, shape index: {}]   ;;  %s4376_s3 = inlined_call_operand.vmem [shape: f32[168,84], index: 3, kind: input, shape index: {}]   ;;  %s4377_s2 = inlined_call_operand.vmem [shape: f32[1,168], index: 2, kind: input, shape index: {}]   ;;  %s4378_s4 = inlined_call_operand.vmem [shape: f32[5,84,160], index: 4, kind: input, shape index: {}]   ;;  %s4379_s6 = inlined_call_operand.vmem [shape: f32[160,80], index: 6, kind: input, shape index: {}]   ;;  %s4380_s5 = inlined_call_operand.vmem [shape: f32[1,160], index: 5, kind: input, shape index: {}]   ;;  %s4381_s7 = inlined_call_operand.vmem [shape: f32[5,80,120], index: 7, kind: input, shape index: {}]   ;;  %s4382_s9 = inlined_call_operand.vmem [shape: f32[120,84], index: 9, kind: input, shape index: {}]   ;;  %s4383_s8 = inlined_call_operand.vmem [shape: f32[1,120], index: 8, kind: input, shape index: {}]   ;;  %s4384_s10 = inlined_call_operand.vmem [shape: f32[1,84], index: 10, kind: input, shape index: {}]   ;;  %s4385_s11 = inlined_call_operand.vmem [shape: f32[84,128], index: 11, kind: input, shape index: {}]   ;;  %s4386_s12 = inlined_call_operand.vmem [shape: f32[1,128], index: 12, kind: input, shape index: {}]   ;;  %s4387_s13 = inlined_call_operand.vmem [shape: f32[2,128], index: 13, kind: output, shape index: {}]  }
   0x1   :  { %v2283_v0 = vld [vmem:[%s4374_s1 + $0x70] sm:$0xff]  ;;  %v2284_v1 = vld [vmem:[%s4374_s1 + $0x78] sm:$0xff]  ;;  %v2281_v2 = vld [vmem:[%s4374_s1 + $0x60] sm:$0xff]  ;;  %vm370_vm5 = vcmask 1045508   ;;  %vm557_vm7 = vcmask 1040384   ;;  %vm558_vm8 = vcmask 1044484  }
   0x2   :  { %187 = vmatpush.msra.mxu0 %v2283_v0  ;;  %225 = vmatpush.msra.mxu1 %v2284_v1  ;;  %v2282_v3 = vld [vmem:[%s4374_s1 + $0x68] sm:$0xff]  ;;  %v2279_v4 = vld [vmem:[%s4374_s1 + $0x50] sm:$0xff]  ;;  %v2280_v5 = vld [vmem:[%s4374_s1 + $0x58] sm:$0xff]  ;;  %vm970_vm10 = vcmask 326656   ;;  %vm1344_vm11 = vcmask 1043456   ;;  %vm1314_vm12 = vcmask 1041409  }
   0x3   :  { %v2277_v6 = vld [vmem:[%s4374_s1 + $0x40] sm:$0xff]  ;;  %2607 = vmatpush.msra.mxu2 %v2284_v1  ;;  %v2278_v8 = vld [vmem:[%s4374_s1 + $0x48] sm:$0xff]  ;;  %vm2766_vm2 = vmor %vm76_vm0, %vm77_vm1  ;;  %vm1316_vm13 = vcmask 1042434   ;;  %vm1318_vm14 = vcmask 1043459   ;;  %vm1321_vm15 = vcmask 1045509   ;;  %vm1323_vm0 = vcmask 1046534  }
   0x4   :  { %v2752_v7 = vld [vmem:[%s4375_s0] sm:$0xff]  ;;  %188 = vmatpush.msra.mxu0 %v2281_v2  ;;  %226 = vmatpush.msra.mxu1 %v2282_v3  ;;  %v2760_v9 = vld [vmem:[%s4375_s0 + $0x8] sm:$0xff]  ;;  %v2775_v14 = vld [vmem:[%s4375_s0 + $0x10] sm:$0xff]  ;;  %vm1325_vm1 = vcmask 1047559  }
   0x5   :  { %v2763_v10 = vrot.slane %v2752_v7, 4  ;;  %v2275_v12 = vrot.slane %v2752_v7, 9  ;;  %v84_v13 = vrot.slane %v2760_v9, 5  ;;  %2608 = vmatpush.msra.mxu2 %v2282_v3  ;;  %v2778_v15 = vrot.slane %v2760_v9, 4  ;;  %v2783_v16 = vld [vmem:[%s4375_s0 + $0x18] sm:$0xff]  ;;  %v2788_v17 = vld [vmem:[%s4375_s0 + $0x30] sm:$0xff]  ;;  %vm2954_vm6 = vmor %vm369_vm4, %vm370_vm5 }
   0x6   :  { %189 = vmatpush.msra.mxu0 %v2279_v4  ;;  %227 = vmatpush.msra.mxu1 %v2280_v5  ;;  %v2321_v19 = vld [vmem:[%s4374_s1 + $0xb0] sm:$0xff]  ;;  %v90_v20 = vrot.slane %v2775_v14, 5  ;;  %v2798_v21 = vld [vmem:[%s4375_s0 + $0x38] sm:$0xff]  ;;  %v2801_v22 = vrot.slane %v2775_v14, 4  ;;  %v2804_v23 = vrot.slane %v2788_v17, 4  ;;  %v96_v27 = vrot.slane %v2783_v16, 5  ;;  %vm3067_vm9 = vmor %vm557_vm7, %vm558_vm8 }
   0x7   :  { %v81_v18 = vrot.slane %v2763_v10, 5  ;;  %2609 = vmatpush.msra.mxu2 %v2280_v5  ;;  %v86_v24 = vrot.slane %v84_v13, 4  ;;  %v87_v25 = vrot.slane %v2778_v15, 5  ;;  %v2808_v26 = vrot.slane %v2798_v21, 4  ;;  %v2322_v28 = vld [vmem:[%s4374_s1 + $0xb8] sm:$0xff]  ;;  %v72_v29 = vld [vmem:[%s4374_s1 + $0x30] sm:$0xff] }
   0x8   :  { %190 = vmatpush.msra.mxu0 %v2277_v6  ;;  %228 = vmatpush.msra.mxu1 %v2278_v8  ;;  %v92_v32 = vrot.slane %v90_v20, 4  ;;  %v93_v33 = vrot.slane %v2801_v22, 5  ;;  %v73_v34 = vld [vmem:[%s4374_s1 + $0x38] sm:$0xff]  ;;  %v70_v37 = vld [vmem:[%s4374_s1 + $0x20] sm:$0xff]  ;;  %v71_v38 = vld [vmem:[%s4374_s1 + $0x28] sm:$0xff]  ;;  %v115_v42 = vrot.slane %v2804_v23, 5 }
   0x9   :  { %v82_v30 = vsel %vm2766_vm2, %v2275_v12, %v81_v18  ;;  %v83_v31 = vrot.slane %v81_v18, 4  ;;  %2610 = vmatpush.msra.mxu2 %v2278_v8  ;;  %v88_v35 = vsel %vm2766_vm2, %v86_v24, %v87_v25  ;;  %v89_v36 = vrot.slane %v87_v25, 4  ;;  %v68_v43 = vld [vmem:[%s4374_s1 + $0x10] sm:$0xff]  ;;  %v2319_v44 = vld [vmem:[%s4374_s1 + $0xa0] sm:$0xff]  ;;  %343 = vmatpush.msra.mxu3 %v73_v34  ;;  %v69_v48 = vld [vmem:[%s4374_s1 + $0x18] sm:$0xff] }
   0xa   :  { %132 = vst [vmem:[#allocation1] ss:$2 sm:$0xff] %v82_v30  ;;  %479 = vmatpush.msrb.mxu0 %v2321_v19  ;;  %v94_v40 = vsel %vm2766_vm2, %v92_v32, %v93_v33  ;;  %v95_v41 = vrot.slane %v93_v33, 4  ;;  %517 = vmatpush.msrb.mxu1 %v2322_v28  ;;  %v118_v46 = vrot.slane %v2798_v21, 5  ;;  %v121_v47 = vrot.slane %v2808_v26, 5  ;;  %v2852_v49 = vld [vmem:[%s4375_s0 + $0x20] sm:$0xff] }
   0xb   :  { %v85_v39 = vsel %vm2766_vm2, %v83_v31, %v84_v13  ;;  %136 = vst [vmem:[#allocation1 + $0x10] ss:$2 sm:$0xff] %v88_v35  ;;  %305 = vmatpush.msrb.mxu2 %v72_v29  ;;  %v91_v45 = vsel %vm2766_vm2, %v89_v36, %v90_v20  ;;  %v2859_v51 = vld [vmem:[%s4375_s0 + $0x28] sm:$0xff]  ;;  %v2862_v52 = vrot.slane %v2852_v49, 4  ;;  %v2868_v54 = vrot.slane %v2783_v16, 4  ;;  %344 = vmatpush.msra.mxu3 %v71_v38  ;;  %v66_v55 = vld [vmem:[%s4374_s1] sm:$0xff] }
   0xc   :  { %134 = vst [vmem:[#allocation1 + $0x1] ss:$2 sm:$0xff] %v85_v39  ;;  %480 = vmatpush.msrb.mxu0 %v2319_v44  ;;  %v97_v50 = vsel %vm2766_vm2, %v95_v41, %v96_v27  ;;  %v2320_v53 = vld [vmem:[%s4374_s1 + $0xa8] sm:$0xff]  ;;  %v2877_v57 = vrot.slane %v2859_v51, 4  ;;  %v106_v58 = vrot.slane %v2859_v51, 5  ;;  %v98_v60 = vrot.slane %v96_v27, 4 }
   0xd   :  { %138 = vst [vmem:[#allocation1 + $0x11] ss:$2 sm:$0xff] %v91_v45  ;;  %306 = vmatpush.msrb.mxu2 %v70_v37  ;;  %v67_v56 = vld [vmem:[%s4374_s1 + $0x8] sm:$0xff]  ;;  %518 = vmatpush.msrb.mxu1 %v2320_v53  ;;  %v103_v59 = vrot.slane %v2862_v52, 5  ;;  %v99_v61 = vrot.slane %v2868_v54, 5  ;;  %v2276_v62 = vrot.slane %v2852_v49, 9 }
   0xe   :  { %140 = vst [vmem:[#allocation1 + $0x20] ss:$2 sm:$0xff] %v94_v40  ;;  %v117_v63 = vrot.slane %v115_v42, 4  ;;  %345 = vmatpush.msra.mxu3 %v69_v48  ;;  %v108_v0 = vrot.slane %v106_v58, 4  ;;  %v109_v1 = vrot.slane %v2877_v57, 5  ;;  %v112_v2 = vrot.slane %v2788_v17, 5 }
   0xf   :  { %142 = vst [vmem:[#allocation1 + $0x21] ss:$2 sm:$0xff] %v97_v50  ;;  %307 = vmatpush.msrb.mxu2 %v68_v43  ;;  %v2317_v3 = vld [vmem:[%s4374_s1 + $0x90] sm:$0xff]  ;;  %v120_v4 = vrot.slane %v118_v46, 4  ;;  %v105_v5 = vrot.slane %v103_v59, 4  ;;  %v100_v6 = vsel %vm2766_vm2, %v98_v60, %v99_v61  ;;  %v104_v8 = vsel %vm2766_vm2, %v2276_v62, %v103_v59  ;;  %v2318_v31 = vld [vmem:[%s4374_s1 + $0x98] sm:$0xff] }
  0x10   :  { %481 = vmatpush.msrb.mxu0 %v2317_v3  ;;  %346 = vmatpush.msra.mxu3 %v67_v56  ;;  %v110_v12 = vsel %vm2766_vm2, %v108_v0, %v109_v1  ;;  %144 = vst [vmem:[#allocation1 + $0x30] ss:$2 sm:$0xff] %v100_v6  ;;  %v111_v13 = vrot.slane %v109_v1, 4  ;;  %v114_v18 = vrot.slane %v112_v2, 4  ;;  %v119_v25 = vsel %vm2766_vm2, %v117_v63, %v118_v46  ;;  %v2315_v35 = vld [vmem:[%s4374_s1 + $0x80] sm:$0xff]  ;;  %v2316_v36 = vld [vmem:[%s4374_s1 + $0x88] sm:$0xff] }
  0x11   :  { %308 = vmatpush.msrb.mxu2 %v66_v55  ;;  %v107_v20 = vsel %vm2766_vm2, %v105_v5, %v106_v58  ;;  %146 = vst [vmem:[#allocation1 + $0x31] ss:$2 sm:$0xff] %v104_v8  ;;  %v122_v28 = vsel %vm2766_vm2, %v120_v4, %v121_v47  ;;  %519 = vmatpush.msrb.mxu1 %v2318_v31  ;;  %v374_v38 = vrot.slane %v2763_v10, 6  ;;  %v2313_v40 = vrot.slane %v2752_v7, 10  ;;  %v2345_v41 = vld [vmem:[%s4374_s1 + $0xf0] sm:$0xff]  ;;  %v2368_v3 = vld [vmem:[%s4374_s1 + $0x138] sm:$0xff] }
  0x12   :  { %v113_v27 = vsel %vm2766_vm2, %v111_v13, %v112_v2  ;;  %v116_v30 = vsel %vm2766_vm2, %v114_v18, %v115_v42  ;;  %482 = vmatpush.msrb.mxu0 %v2315_v35  ;;  %v2346_v42 = vld [vmem:[%s4374_s1 + $0xf8] sm:$0xff]  ;;  %v377_v45 = vrot.slane %v2760_v9, 6  ;;  %v380_v47 = vrot.slane %v2778_v15, 6  ;;  %v2367_v63 = vld [vmem:[%s4374_s1 + $0x130] sm:$0xff]  ;;  %v2343_v4 = vld [vmem:[%s4374_s1 + $0xe0] sm:$0xff] }
  0x13   :  { %v147_v19 = vld.sshfl [vmem:[#allocation1] sm:$0xff pattern:$0x75316420]  ;;  %520 = vmatpush.msrb.mxu1 %v2316_v36  ;;  %v376_v44 = vrot.slane %v374_v38, 4  ;;  %705 = vmatpush.msrb.mxu3 %v2346_v42  ;;  %v383_v48 = vrot.slane %v2775_v14, 6  ;;  %v386_v50 = vrot.slane %v2801_v22, 6  ;;  %v375_v53 = vsel %vm2954_vm6, %v2313_v40, %v374_v38 }
  0x14   :  { %2285 = vmatmul.msk.f32.vlgmr.msra.gmra.mxu0 %vm160_vm3, %v147_v19  ;;  %2292 = vmatmul.msk.f32.vlgmr.msra.gmra.mxu1 %vm160_vm3, %v147_v19  ;;  %v148_v24 = vld.sshfl [vmem:[#allocation1 + $0x10] sm:$0xff pattern:$0x75316420]  ;;  %151 = vst [vmem:[#allocation1] ss:$2 sm:$0xff] %v107_v20  ;;  %v379_v56 = vrot.slane %v377_v45, 4 }
  0x15   :  { %152 = vst [vmem:[#allocation1 + $0x1] ss:$2 sm:$0xff] %v110_v12  ;;  %v378_v55 = vsel %vm2954_vm6, %v376_v44, %v377_v45  ;;  %v385_v58 = vrot.slane %v383_v48, 4  ;;  %v382_v60 = vrot.slane %v380_v47, 4  ;;  %v388_v61 = vrot.slane %v386_v50, 4  ;;  %837 = vmatpush.msra.mxu0 %v2367_v63  ;;  %v2344_v5 = vld [vmem:[%s4374_s1 + $0xe8] sm:$0xff]  ;;  %875 = vmatpush.msra.mxu1 %v2368_v3 }
  0x16   :  { %v149_v29 = vld.sshfl [vmem:[#allocation1 + $0x20] sm:$0xff pattern:$0x75316420]  ;;  %153 = vst [vmem:[#allocation1 + $0x10] ss:$2 sm:$0xff] %v113_v27  ;;  %v389_v62 = vrot.slane %v2783_v16, 6  ;;  %v381_v2 = vsel %vm2954_vm6, %v379_v56, %v380_v47  ;;  %706 = vmatpush.msrb.mxu3 %v2344_v5 }
  0x17   :  { %155 = vst [vmem:[#allocation1 + $0x20] ss:$2 sm:$0xff] %v119_v25  ;;  %v387_v0 = vsel %vm2954_vm6, %v385_v58, %v386_v50  ;;  %v396_v1 = vrot.slane %v2862_v52, 6  ;;  %v384_v6 = vsel %vm2954_vm6, %v382_v60, %v383_v48  ;;  %v405_v13 = vrot.slane %v2788_v17, 6  ;;  %v2341_v38 = vld [vmem:[%s4374_s1 + $0xd0] sm:$0xff]  ;;  %v2342_v40 = vld [vmem:[%s4374_s1 + $0xd8] sm:$0xff] }
  0x18   :  { %156 = vst [vmem:[#allocation1 + $0x21] ss:$2 sm:$0xff] %v122_v28  ;;  %v150_v32 = vld.sshfl [vmem:[#allocation1 + $0x30] sm:$0xff pattern:$0x75316420]  ;;  %v390_v18 = vsel %vm2954_vm6, %v388_v61, %v389_v62  ;;  %v402_v19 = vrot.slane %v2877_v57, 6  ;;  %707 = vmatpush.msrb.mxu3 %v2342_v40 }
  0x19   :  { %154 = vst [vmem:[#allocation1 + $0x11] ss:$2 sm:$0xff] %v116_v30  ;;  %v398_v20 = vrot.slane %v396_v1, 4  ;;  %v391_v25 = vrot.slane %v389_v62, 4  ;;  %v392_v27 = vrot.slane %v2868_v54, 6  ;;  %v2314_v28 = vrot.slane %v2852_v49, 10 }
  0x1a   :  { %263 = vst [vmem:[#allocation1 + $0x30] ss:$2 sm:$0xff] %v2783_v16  ;;  %v408_v30 = vrot.slane %v2804_v23, 6  ;;  %v2366_v45 = vld [vmem:[%s4374_s1 + $0x128] sm:$0xff]  ;;  %v568_v60 = vrot.slane %v2778_v15, 7  ;;  %v577_v61 = vrot.slane %v2783_v16, 7 }
  0x1b   :  { %265 = vst [vmem:[#allocation1 + $0x31] ss:$2 sm:$0xff] %v2852_v49  ;;  %v397_v35 = vsel %vm2954_vm6, %v2314_v28, %v396_v1  ;;  %v2340_v47 = vld [vmem:[%s4374_s1 + $0xc8] sm:$0xff]  ;;  %876 = vmatpush.msra.mxu1 %v2366_v45  ;;  %v580_v1 = vrot.slane %v2868_v54, 7  ;;  %v584_v3 = vrot.slane %v2862_v52, 7  ;;  %v565_v5 = vrot.slane %v2760_v9, 7 }
  0x1c   :  { %2286 = vmatmul.msk.f32.gmra.mxu0 %vm160_vm3, %v148_v24  ;;  %2293 = vmatmul.msk.f32.gmra.mxu1 %vm160_vm3, %v148_v24  ;;  %v2916_v33 = vld.sshfl [vmem:[#allocation1] sm:$0xff pattern:$0x75316420]  ;;  %v399_v24 = vrot.slane %v2859_v51, 6  ;;  %v410_v36 = vrot.slane %v408_v30, 4  ;;  %v570_v43 = vrot.slane %v568_v60, 4 }
  0x1d   :  { %251 = vst [vmem:[#allocation1] ss:$2 sm:$0xff] %v2752_v7  ;;  %708 = vmatpush.msrb.mxu3 %v2340_v47  ;;  %v571_v54 = vrot.slane %v2775_v14, 7  ;;  %vm1337_vm2 = vcmask 687104   ;;  %vm2204_vm4 = vcmask 982016  }
  0x1e   :  { %253 = vst [vmem:[#allocation1 + $0x1] ss:$2 sm:$0xff] %v2763_v10  ;;  %v400_v42 = vsel %vm2954_vm6, %v398_v20, %v399_v24  ;;  %v401_v44 = vrot.slane %v399_v24, 4 }
  0x1f   :  { %v2921_v11 = vld.sshfl [vmem:[#allocation1 + $0x20] sm:$0xff pattern:$0x75316420] }
  0x20   :  { %2298 = vmatmul.msk.f32.vlgmr.msra.gmra.mxu2 %vm160_vm3, %v2921_v11  ;;  %259 = vst [vmem:[#allocation1 + $0x20] ss:$2 sm:$0xff] %v2775_v14  ;;  %v2926_v34 = vld.sshfl [vmem:[#allocation1 + $0x10] sm:$0xff pattern:$0x75316420] }
  0x21   :  { %261 = vst [vmem:[#allocation1 + $0x21] ss:$2 sm:$0xff] %v2801_v22  ;;  %667 = vmatpush.msra.mxu2 %v2345_v41  ;;  %v2365_v41 = vld [vmem:[%s4374_s1 + $0x120] sm:$0xff] }
  0x22   :  { %255 = vst [vmem:[#allocation1 + $0x10] ss:$2 sm:$0xff] %v2760_v9  ;;  %v269_v31 = vld.sshfl [vmem:[#allocation1 + $0x30] sm:$0xff pattern:$0x75316420]  ;;  %838 = vmatpush.msra.mxu0 %v2365_v41 }
  0x23   :  { %257 = vst [vmem:[#allocation1 + $0x11] ss:$2 sm:$0xff] %v2778_v15  ;;  %668 = vmatpush.msra.mxu2 %v2343_v4  ;;  %v562_v4 = vrot.slane %v2763_v10, 7  ;;  %v567_v10 = vrot.slane %v565_v5, 4 }
  0x24   :  { %2287 = vmatmul.msk.f32.gmra.mxu0 %vm160_vm3, %v149_v29  ;;  %2294 = vmatmul.msk.f32.gmra.mxu1 %vm160_vm3, %v149_v29  ;;  %v404_v29 = vrot.slane %v402_v19, 4  ;;  %439 = vst [vmem:[#allocation1 + $0x31] ss:$2 sm:$0xff] %v397_v35 }
  0x25   :  { %v266_v37 = vld.sshfl [vmem:[#allocation1] sm:$0xff pattern:$0x75316420]  ;;  %669 = vmatpush.msra.mxu2 %v2341_v38  ;;  %v564_v20 = vrot.slane %v562_v4, 4  ;;  %v569_v24 = vsel %vm3067_vm9, %v567_v10, %v568_v60  ;;  %v2364_v38 = vld [vmem:[%s4374_s1 + $0x118] sm:$0xff] }
  0x26   :  { %270 = vst [vmem:[#allocation1] ss:$2 sm:$0xff] %v2862_v52  ;;  %2306 = vmatmul.msk.f32.vlgmr.msra.gmra.mxu3 %vm160_vm3, %v266_v37  ;;  %v406_v50 = vsel %vm2954_vm6, %v404_v29, %v405_v13  ;;  %v593_v29 = vrot.slane %v2788_v17, 7  ;;  %877 = vmatpush.msra.mxu1 %v2364_v38 }
  0x27   :  { %271 = vst [vmem:[#allocation1 + $0x1] ss:$2 sm:$0xff] %v2859_v51 }
  0x28   :  { %2299 = vmatmul.msk.f32.vlgmr.msrb.gmra.mxu2 %vm160_vm3, %v266_v37  ;;  %v2944_v39 = vld.sshfl [vmem:[#allocation1 + $0x20] sm:$0xff pattern:$0x75316420]  ;;  %v411_v37 = vrot.slane %v2798_v21, 6  ;;  %v595_v41 = vrot.slane %v593_v29, 4 }
  0x29   :  { %274 = vst [vmem:[#allocation1 + $0x20] ss:$2 sm:$0xff] %v2804_v23 }
  0x2a   :  { %v267_v46 = vld.sshfl [vmem:[#allocation1 + $0x10] sm:$0xff pattern:$0x75316420]  ;;  %275 = vst [vmem:[#allocation1 + $0x21] ss:$2 sm:$0xff] %v2798_v21  ;;  %v412_v58 = vsel %vm2954_vm6, %v410_v36, %v411_v37 }
  0x2b   :  { %272 = vst [vmem:[#allocation1 + $0x10] ss:$2 sm:$0xff] %v2877_v57 }
  0x2c   :  { %2288 = vmatmul.msk.f32.gmra.mxu0 %vm160_vm3, %v150_v32  ;;  %2295 = vmatmul.msk.f32.gmra.mxu1 %vm160_vm3, %v150_v32  ;;  %273 = vst [vmem:[#allocation1 + $0x11] ss:$2 sm:$0xff] %v2788_v17  ;;  %v407_v32 = vrot.slane %v405_v13, 4 }
  0x2e   :  { %2307 = vmatmul.msk.f32.gmra.mxu3 %vm160_vm3, %v267_v46  ;;  %v2972_v59 = vld.sshfl [vmem:[#allocation1] sm:$0xff pattern:$0x75316420] }
  0x2f   :  { %425 = vst [vmem:[#allocation1] ss:$2 sm:$0xff] %v375_v53  ;;  %v413_v53 = vrot.slane %v411_v37, 4  ;;  %v2363_v37 = vld [vmem:[%s4374_s1 + $0x110] sm:$0xff] }
  0x30   :  { %2300 = vmatmul.msk.f32.gmra.mxu2 %vm160_vm3, %v267_v46  ;;  %427 = vst [vmem:[#allocation1 + $0x1] ss:$2 sm:$0xff] %v378_v55  ;;  %v2339_v46 = vld [vmem:[%s4374_s1 + $0xc0] sm:$0xff]  ;;  %v409_v55 = vsel %vm2954_vm6, %v407_v32, %v408_v30  ;;  %v590_v30 = vrot.slane %v2877_v57, 7  ;;  %v566_v32 = vsel %vm3067_vm9, %v564_v20, %v565_v5  ;;  %839 = vmatpush.msra.mxu0 %v2363_v37 }
  0x31   :  { %v2995_v8 = vld.sshfl [vmem:[#allocation1 + $0x20] sm:$0xff pattern:$0x75316420]  ;;  %670 = vmatpush.msra.mxu2 %v2339_v46 }
  0x32   :  { %433 = vst [vmem:[#allocation1 + $0x20] ss:$2 sm:$0xff] %v387_v0  ;;  %v579_v0 = vrot.slane %v577_v61, 4  ;;  %v592_v36 = vrot.slane %v590_v30, 4 }
  0x33   :  { %v2997_v12 = vld.sshfl [vmem:[#allocation1 + $0x10] sm:$0xff pattern:$0x75316420]  ;;  %435 = vst [vmem:[#allocation1 + $0x21] ss:$2 sm:$0xff] %v390_v18 }
  0x34   :  { %2289 = vmatmul.msk.f32.gmra.mxu0 %vm160_vm3, %v2916_v33  ;;  %2296 = vmatmul.msk.f32.gmra.mxu1 %vm160_vm3, %v2916_v33  ;;  %429 = vst [vmem:[#allocation1 + $0x10] ss:$2 sm:$0xff] %v381_v2  ;;  %v393_v33 = vsel %vm2954_vm6, %v391_v25, %v392_v27  ;;  %v2338_v2 = vrot.slane %v2852_v49, 11  ;;  %v581_v13 = vsel %vm3067_vm9, %v579_v0, %v580_v1  ;;  %v573_v25 = vrot.slane %v571_v54, 4 }
  0x35   :  { %431 = vst [vmem:[#allocation1 + $0x11] ss:$2 sm:$0xff] %v384_v6  ;;  %v574_v6 = vrot.slane %v2801_v22, 7  ;;  %v572_v22 = vsel %vm3067_vm9, %v570_v43, %v571_v54  ;;  %v594_v45 = vsel %vm3067_vm9, %v592_v36, %v593_v29  ;;  %v969_v36 = vld [vmem:[%s4376_s3 + $0xa0] sm:$0xff] }
  0x36   :  { %2308 = vmatmul.msk.f32.gmra.mxu3 %vm160_vm3, %v2944_v39  ;;  %437 = vst [vmem:[#allocation1 + $0x30] ss:$2 sm:$0xff] %v393_v33  ;;  %v585_v52 = vsel %vm3067_vm9, %v2338_v2, %v584_v3 }
  0x37   :  { %v3041_v48 = vld.sshfl [vmem:[#allocation1] sm:$0xff pattern:$0x75316420]  ;;  %v576_v27 = vrot.slane %v574_v6, 4  ;;  %v575_v35 = vsel %vm3067_vm9, %v573_v25, %v574_v6  ;;  %1041 = vmatpush.msra.mxu3 %v969_v36 }
  0x38   :  { %2301 = vmatmul.msk.f32.gmra.mxu2 %vm160_vm3, %v2944_v39  ;;  %v414_v39 = vrot.slane %v2808_v26, 6  ;;  %444 = vst [vmem:[#allocation1] ss:$2 sm:$0xff] %v400_v42  ;;  %v586_v42 = vrot.slane %v584_v3, 4 }
  0x39   :  { %v578_v40 = vsel %vm3067_vm9, %v576_v27, %v577_v61 }
  0x3a   :  { %v415_v62 = vsel %vm2954_vm6, %v413_v53, %v414_v39  ;;  %v3059_v63 = vld.sshfl [vmem:[#allocation1 + $0x20] sm:$0xff pattern:$0x75316420]  ;;  %v602_v53 = vrot.slane %v2808_v26, 7 }
  0x3b   :  { %448 = vst [vmem:[#allocation1 + $0x20] ss:$2 sm:$0xff] %v412_v58 }
  0x3c   :  { %2290 = vmatmul.msk.f32.gmra.mxu0 %vm160_vm3, %v2926_v34  ;;  %2297 = vmatmul.msk.f32.gmra.mxu1 %vm160_vm3, %v2926_v34  ;;  %v3051_v56 = vld.sshfl [vmem:[#allocation1 + $0x10] sm:$0xff pattern:$0x75316420]  ;;  %v403_v34 = vsel %vm2954_vm6, %v401_v44, %v402_v19  ;;  %449 = vst [vmem:[#allocation1 + $0x21] ss:$2 sm:$0xff] %v415_v62  ;;  %v2337_v19 = vrot.slane %v2752_v7, 11 }
  0x3d   :  { %446 = vst [vmem:[#allocation1 + $0x10] ss:$2 sm:$0xff] %v406_v50  ;;  %v3080_v18 = vld.sshfl [vmem:[#allocation1 + $0x30] sm:$0xff pattern:$0x75316420]  ;;  %v599_v44 = vrot.slane %v2798_v21, 7 }
  0x3e   :  { %2309 = vmatmul.msk.f32.gmra.mxu3 %vm160_vm3, %v269_v31  ;;  %447 = vst [vmem:[#allocation1 + $0x11] ss:$2 sm:$0xff] %v409_v55 }
  0x3f   :  { %445 = vst [vmem:[#allocation1 + $0x1] ss:$2 sm:$0xff] %v403_v34  ;;  %v601_v50 = vrot.slane %v599_v44, 4  ;;  %v2362_v34 = vld [vmem:[%s4374_s1 + $0x108] sm:$0xff] }
  0x40   :  { %2302 = vmatmul.msk.f32.gmra.mxu2 %vm160_vm3, %v269_v31  ;;  %625 = vst [vmem:[#allocation1 + $0x30] ss:$2 sm:$0xff] %v581_v13  ;;  %v587_v31 = vrot.slane %v2859_v51, 7  ;;  %878 = vmatpush.msra.mxu1 %v2362_v34  ;;  %v956_v34 = vld [vmem:[%s4376_s3 + $0x38] sm:$0xff] }
  0x41   :  { %627 = vst [vmem:[#allocation1 + $0x31] ss:$2 sm:$0xff] %v585_v52  ;;  %v603_v61 = vsel %vm3067_vm9, %v601_v50, %v602_v53 }
  0x42   :  { %v589_v39 = vrot.slane %v587_v31, 4 }
  0x43   :  { %v3104_v33 = vld.sshfl [vmem:[#allocation1 + $0x20] sm:$0xff pattern:$0x75316420] }
  0x44   :  { %2291 = vmatmul.msk.f32.gmra.mxu0 %vm160_vm3, %v2921_v11  ;;  %2330 = vmatmul.msk.f32.vlgmr.msrb.gmra.mxu1 %vm160_vm3, %v3041_v48  ;;  %v563_v11 = vsel %vm3067_vm9, %v2337_v19, %v562_v4  ;;  %621 = vst [vmem:[#allocation1 + $0x20] ss:$2 sm:$0xff] %v575_v35  ;;  %v591_v55 = vsel %vm3067_vm9, %v589_v39, %v590_v30  ;;  %v964_v35 = vld [vmem:[%s4376_s3 + $0x78] sm:$0xff] }
  0x45   :  { %v3093_v28 = vld.sshfl [vmem:[#allocation1 + $0x10] sm:$0xff pattern:$0x75316420]  ;;  %623 = vst [vmem:[#allocation1 + $0x21] ss:$2 sm:$0xff] %v578_v40  ;;  %992 = vmatpush.msrb.mxu2 %v964_v35 }
  0x46   :  { %2310 = vmatmul.msk.f32.gmra.mxu3 %vm160_vm3, %v2972_v59  ;;  %617 = vst [vmem:[#allocation1 + $0x10] ss:$2 sm:$0xff] %v569_v24  ;;  %v3110_v57 = vld.sshfl [vmem:[#allocation1] sm:$0xff pattern:$0x75316420] }
  0x47   :  { %619 = vst [vmem:[#allocation1 + $0x11] ss:$2 sm:$0xff] %v572_v22 }
  0x48   :  { %2303 = vmatmul.msk.f32.gmra.mxu2 %vm160_vm3, %v2972_v59  ;;  %613 = vst [vmem:[#allocation1] ss:$2 sm:$0xff] %v563_v11  ;;  %v596_v59 = vrot.slane %v2804_v23, 7 }
  0x49   :  { %615 = vst [vmem:[#allocation1 + $0x1] ss:$2 sm:$0xff] %v566_v32 }
  0x4a   :  { %v597_v23 = vsel %vm3067_vm9, %v595_v41, %v596_v59  ;;  %v598_v46 = vrot.slane %v596_v59, 4  ;;  %v963_v41 = vld [vmem:[%s4376_s3 + $0x70] sm:$0xff]  ;;  %v962_v59 = vld [vmem:[%s4376_s3 + $0x68] sm:$0xff] }
  0x4b   :  { %993 = vmatpush.msrb.mxu2 %v963_v41  ;;  %v915_v41 = vld [vmem:[%s4377_s2] sm:$0x3] }
  0x4c   :  { %2323 = vmatmul.msk.f32.vlgmr.msrb.gmra.mxu0 %vm160_vm3, %v3041_v48  ;;  %2331 = vmatmul.msk.f32.gmra.mxu1 %vm160_vm3, %v3051_v56  ;;  %v588_v48 = vsel %vm3067_vm9, %v586_v42, %v587_v31  ;;  %v600_v60 = vsel %vm3067_vm9, %v598_v46, %v599_v44  ;;  %v630_v26 = vld.sshfl [vmem:[#allocation1 + $0x20] sm:$0xff pattern:$0x75316420]  ;;  %v968_v46 = vld [vmem:[%s4376_s3 + $0x98] sm:$0xff] }
  0x4d   :  { %636 = vst [vmem:[#allocation1 + $0x20] ss:$2 sm:$0xff] %v600_v60  ;;  %994 = vmatpush.msrb.mxu2 %v962_v59  ;;  %1042 = vmatpush.msra.mxu3 %v968_v46  ;;  %v958_v60 = vld [vmem:[%s4376_s3 + $0x48] sm:$0xff] }
  0x4e   :  { %2311 = vmatmul.msk.f32.gmra.mxu3 %vm160_vm3, %v2997_v12  ;;  %v629_v47 = vld.sshfl [vmem:[#allocation1 + $0x10] sm:$0xff pattern:$0x75316420]  ;;  %637 = vst [vmem:[#allocation1 + $0x21] ss:$2 sm:$0xff] %v603_v61 }
  0x4f   :  { %634 = vst [vmem:[#allocation1 + $0x10] ss:$2 sm:$0xff] %v594_v45  ;;  %v967_v61 = vld [vmem:[%s4376_s3 + $0x90] sm:$0xff] }
  0x50   :  { %2304 = vmatmul.msk.f32.gmra.mxu2 %vm160_vm3, %v2997_v12  ;;  %635 = vst [vmem:[#allocation1 + $0x11] ss:$2 sm:$0xff] %v597_v23  ;;  %v628_v58 = vld.sshfl [vmem:[#allocation1] sm:$0xff pattern:$0x75316420]  ;;  %1043 = vmatpush.msra.mxu3 %v967_v61 }
  0x51   :  { %632 = vst [vmem:[#allocation1] ss:$2 sm:$0xff] %v588_v48  ;;  %v3147_v12 = vld.sshfl [vmem:[#allocation1 + $0x30] sm:$0xff pattern:$0x75316420]  ;;  %v961_v23 = vld [vmem:[%s4376_s3 + $0x60] sm:$0xff] }
  0x52   :  { %633 = vst [vmem:[#allocation1 + $0x1] ss:$2 sm:$0xff] %v591_v55  ;;  %995 = vmatpush.msrb.mxu2 %v961_v23 }
  0x53   :  { %748 = vst.sshfl [vmem:[#allocation1 + $0x30] sm:$0xff pattern:$0x75316420] %v2783_v16 }
  0x54   :  { %2324 = vmatmul.msk.f32.gmra.mxu0 %vm160_vm3, %v3051_v56  ;;  %2332 = vmatmul.msk.f32.gmra.mxu1 %vm160_vm3, %v3059_v63  ;;  %v2361_v56 = vld [vmem:[%s4374_s1 + $0x100] sm:$0xff] }
  0x55   :  { %840 = vmatpush.msra.mxu0 %v2361_v56 }
  0x56   :  { %2312 = vmatmul.msk.f32.gmra.mxu3 %vm160_vm3, %v2995_v8 }
  0x57   :  { %v3152_v62 = vld.sshfl [vmem:[#allocation1 + $0x10] sm:$0xff pattern:$0x75316420] }
  0x58   :  { %2305 = vmatmul.msk.f32.gmra.mxu2 %vm160_vm3, %v2995_v8  ;;  %746 = vst.sshfl [vmem:[#allocation1 + $0x10] sm:$0xff pattern:$0x75316420] %v2760_v9  ;;  %v640_v9 = vld.sshfl [vmem:[#allocation1 + $0x20] sm:$0xff pattern:$0x75316420] }
  0x59   :  { %v638_v0 = vld.sshfl [vmem:[#allocation1] sm:$0xff pattern:$0x75316420]  ;;  %747 = vst.sshfl [vmem:[#allocation1 + $0x20] sm:$0xff pattern:$0x75316420] %v2775_v14 }
  0x5a   :  { %745 = vst.sshfl [vmem:[#allocation1] sm:$0xff pattern:$0x75316420] %v2752_v7  ;;  %v760_v16 = vld [vmem:[#allocation1 + $0x30] ss:$2 sm:$0xff] }
  0x5b   :  { %v762_v8 = vld [vmem:[#allocation1 + $0x31] ss:$2 sm:$0xff] }
  0x5c   :  { %2325 = vmatmul.msk.f32.gmra.mxu0 %vm160_vm3, %v3059_v63  ;;  %2333 = vmatmul.msk.f32.gmra.mxu1 %vm160_vm3, %v3080_v18  ;;  %766 = vst.sshfl [vmem:[#allocation1 + $0x30] sm:$0xff pattern:$0x75316420] %v2798_v21 }
  0x5e   :  { %2354 = vmatmul.msk.f32.vlgmr.msrb.gmra.mxu3 %vm160_vm3, %v628_v58 }
  0x5f   :  { %v752_v1 = vld [vmem:[#allocation1 + $0x10] ss:$2 sm:$0xff]  ;;  %v754_v15 = vld [vmem:[#allocation1 + $0x11] ss:$2 sm:$0xff] }
  0x60   :  { %2347 = vmatmul.msk.f32.vlgmr.msra.gmra.mxu2 %vm160_vm3, %v628_v58  ;;  %764 = vst.sshfl [vmem:[#allocation1 + $0x10] sm:$0xff pattern:$0x75316420] %v2859_v51  ;;  %v756_v14 = vld [vmem:[#allocation1 + $0x20] ss:$2 sm:$0xff]  ;;  %v959_v58 = vld [vmem:[%s4376_s3 + $0x50] sm:$0xff] }
  0x61   :  { %v750_v7 = vld [vmem:[#allocation1 + $0x1] ss:$2 sm:$0xff] }
  0x62   :  { %763 = vst.sshfl [vmem:[#allocation1] sm:$0xff pattern:$0x75316420] %v2852_v49  ;;  %v758_v63 = vld [vmem:[#allocation1 + $0x21] ss:$2 sm:$0xff] }
  0x63   :  { %783 = vst [vmem:[#allocation1] ss:$2 sm:$0xff] %v750_v7  ;;  %v773_v4 = vld [vmem:[#allocation1 + $0x31] ss:$2 sm:$0xff] }
  0x64   :  { %2326 = vmatmul.msk.f32.gmra.mxu0 %vm160_vm3, %v3080_v18  ;;  %2334 = vmatmul.msk.f32.gmra.mxu1 %vm160_vm3, %v3110_v57  ;;  %765 = vst.sshfl [vmem:[#allocation1 + $0x20] sm:$0xff pattern:$0x75316420] %v2788_v17  ;;  %v772_v17 = vld [vmem:[#allocation1 + $0x30] ss:$2 sm:$0xff] }
  0x65   :  { %795 = vst [vmem:[#allocation1 + $0x30] ss:$2 sm:$0xff] %v762_v8 }
  0x66   :  { %2355 = vmatmul.msk.f32.gmra.mxu3 %vm160_vm3, %v629_v47 }
  0x67   :  { %v768_v21 = vld [vmem:[#allocation1 + $0x10] ss:$2 sm:$0xff]  ;;  %v769_v51 = vld [vmem:[#allocation1 + $0x11] ss:$2 sm:$0xff] }
  0x68   :  { %2348 = vmatmul.msk.f32.gmra.mxu2 %vm160_vm3, %v629_v47  ;;  %787 = vst [vmem:[#allocation1 + $0x10] ss:$2 sm:$0xff] %v754_v15  ;;  %v960_v47 = vld [vmem:[%s4376_s3 + $0x58] sm:$0xff]  ;;  %v954_v15 = vld [vmem:[%s4376_s3 + $0x28] sm:$0xff] }
  0x69   :  { %v767_v2 = vld [vmem:[#allocation1 + $0x1] ss:$2 sm:$0xff]  ;;  %789 = vst [vmem:[#allocation1 + $0x11] ss:$2 sm:$0xff] %v756_v14  ;;  %996 = vmatpush.msrb.mxu2 %v960_v47  ;;  %v3367_v47 = vperm.slane %v915_v41, 1 }
  0x6a   :  { %785 = vst [vmem:[#allocation1 + $0x1] ss:$2 sm:$0xff] %v752_v1  ;;  %v966_v1 = vld [vmem:[%s4376_s3 + $0x88] sm:$0xff]  ;;  %v953_v14 = vld [vmem:[%s4376_s3 + $0x20] sm:$0xff] }
  0x6b   :  { %v770_v49 = vld [vmem:[#allocation1 + $0x20] ss:$2 sm:$0xff]  ;;  %v771_v3 = vld [vmem:[#allocation1 + $0x21] ss:$2 sm:$0xff]  ;;  %797 = vst [vmem:[#allocation1 + $0x31] ss:$2 sm:$0xff] %v767_v2  ;;  %997 = vmatpush.msrb.mxu2 %v959_v58  ;;  %1044 = vmatpush.msra.mxu3 %v966_v1 }
  0x6c   :  { %2327 = vmatmul.msk.f32.gmra.mxu0 %vm160_vm3, %v3110_v57  ;;  %2335 = vmatmul.msk.f32.gmra.mxu1 %vm160_vm3, %v3093_v28  ;;  %791 = vst [vmem:[#allocation1 + $0x20] ss:$2 sm:$0xff] %v758_v63  ;;  %v952_v2 = vld [vmem:[%s4376_s3 + $0x18] sm:$0xff] }
  0x6d   :  { %793 = vst [vmem:[#allocation1 + $0x21] ss:$2 sm:$0xff] %v760_v16  ;;  %998 = vmatpush.msrb.mxu2 %v958_v60 }
  0x6e   :  { %2356 = vmatmul.msk.f32.gmra.mxu3 %vm160_vm3, %v630_v26 }
  0x70   :  { %2349 = vmatmul.msk.f32.gmra.mxu2 %vm160_vm3, %v630_v26  ;;  %v799_v5 = vld.sshfl [vmem:[#allocation1 + $0x10] sm:$0xff pattern:$0x75316420]  ;;  %v957_v26 = vld [vmem:[%s4376_s3 + $0x40] sm:$0xff] }
  0x71   :  { %v798_v43 = vld.sshfl [vmem:[#allocation1] sm:$0xff pattern:$0x75316420]  ;;  %804 = vst [vmem:[#allocation1 + $0x10] ss:$2 sm:$0xff] %v770_v49  ;;  %999 = vmatpush.msrb.mxu2 %v957_v26 }
  0x72   :  { %802 = vst [vmem:[#allocation1] ss:$2 sm:$0xff] %v768_v21  ;;  %v801_v18 = vld.sshfl [vmem:[#allocation1 + $0x30] sm:$0xff pattern:$0x75316420] }
  0x73   :  { %803 = vst [vmem:[#allocation1 + $0x1] ss:$2 sm:$0xff] %v769_v51  ;;  %1000 = vmatpush.msrb.mxu2 %v956_v34 }
  0x74   :  { %2328 = vmatmul.msk.f32.gmra.mxu0 %vm160_vm3, %v3093_v28  ;;  %2336 = vmatmul.msk.f32.gmra.mxu1 %vm160_vm3, %v3104_v33  ;;  %805 = vst [vmem:[#allocation1 + $0x11] ss:$2 sm:$0xff] %v771_v3  ;;  %v800_v54 = vld.sshfl [vmem:[#allocation1 + $0x20] sm:$0xff pattern:$0x75316420] }
  0x75   :  { %806 = vst [vmem:[#allocation1 + $0x20] ss:$2 sm:$0xff] %v772_v17  ;;  %v965_v3 = vld [vmem:[%s4376_s3 + $0x80] sm:$0xff]  ;;  %v951_v17 = vld [vmem:[%s4376_s3 + $0x10] sm:$0xff] }
  0x76   :  { %2357 = vmatmul.msk.f32.gmra.mxu3 %vm160_vm3, %v3147_v12  ;;  %807 = vst [vmem:[#allocation1 + $0x21] ss:$2 sm:$0xff] %v773_v4  ;;  %v950_v4 = vld [vmem:[%s4376_s3 + $0x8] sm:$0xff] }
  0x77   :  { %1045 = vmatpush.msra.mxu3 %v965_v3 }
  0x78   :  { %2350 = vmatmul.msk.f32.gmra.mxu2 %vm160_vm3, %v3147_v12 }
  0x7a   :  { %v808_v19 = vld.sshfl [vmem:[#allocation1] sm:$0xff pattern:$0x75316420] }
  0x7b   :  { %v809_v22 = vld.sshfl [vmem:[#allocation1 + $0x10] sm:$0xff pattern:$0x75316420] }
  0x7c   :  { %2329 = vmatmul.msk.f32.gmra.mxu0 %vm160_vm3, %v3104_v33  ;;  %2376 = vmatmul.msk.f32.vlgmr.msra.gmra.mxu1 %vm160_vm3, %v798_v43 }
  0x7d   :  { %v810_v29 = vld.sshfl [vmem:[#allocation1 + $0x20] sm:$0xff pattern:$0x75316420] }
  0x7e   :  { %2358 = vmatmul.msk.f32.gmra.mxu3 %vm160_vm3, %v638_v0 }
  0x80   :  { %2351 = vmatmul.msk.f32.gmra.mxu2 %vm160_vm3, %v638_v0  ;;  %v955_v0 = vld [vmem:[%s4376_s3 + $0x30] sm:$0xff] }
  0x81   :  { %1001 = vmatpush.msrb.mxu2 %v955_v0 }
  0x83   :  { %1002 = vmatpush.msrb.mxu2 %v954_v15  ;;  %v3375_v15 = vperm.slane %v915_v41, 0 }
  0x84   :  { %2369 = vmatmul.msk.f32.vlgmr.msra.gmra.mxu0 %vm160_vm3, %v798_v43  ;;  %2377 = vmatmul.msk.f32.gmra.mxu1 %vm160_vm3, %v799_v5 }
  0x85   :  { %1003 = vmatpush.msrb.mxu2 %v953_v14 }
  0x86   :  { %2359 = vmatmul.msk.f32.gmra.mxu3 %vm160_vm3, %v3152_v62 }
  0x87   :  { %1004 = vmatpush.msrb.mxu2 %v952_v2 }
  0x88   :  { %2352 = vmatmul.msk.f32.gmra.mxu2 %vm160_vm3, %v3152_v62 }
  0x89   :  { %1005 = vmatpush.msrb.mxu2 %v951_v17 }
  0x8b   :  { %1006 = vmatpush.msrb.mxu2 %v950_v4 }
  0x8c   :  { %2370 = vmatmul.msk.f32.gmra.mxu0 %vm160_vm3, %v799_v5  ;;  %2378 = vmatmul.msk.f32.gmra.mxu1 %vm160_vm3, %v800_v54 }
  0x8e   :  { %2360 = vmatmul.msk.f32.gmra.mxu3 %vm160_vm3, %v640_v9 }
  0x90   :  { %2353 = vmatmul.msk.f32.gmra.mxu2 %vm160_vm3, %v640_v9 }
  0x91   :  { %v3210_v6 = vpop.f32.mrf.mxu0  ;;  %v3212_v13 = vpop.f32.mrf.mxu1 }
  0x94   :  { %2371 = vmatmul.msk.f32.gmra.mxu0 %vm160_vm3, %v800_v54  ;;  %2379 = vmatmul.msk.f32.gmra.mxu1 %vm160_vm3, %v801_v18 }
  0x99   :  { %v3216_v52 = vpop.f32.mrf.mxu0  ;;  %v3218_v10 = vpop.f32.mrf.mxu1 }
  0x9c   :  { %2372 = vmatmul.msk.f32.gmra.mxu0 %vm160_vm3, %v801_v18  ;;  %2380 = vmatmul.msk.f32.gmra.mxu1 %vm160_vm3, %v808_v19  ;;  %v949_v18 = vld [vmem:[%s4376_s3] sm:$0xff] }
  0x9d   :  { %1007 = vmatpush.msrb.mxu2 %v949_v18 }
  0xa1   :  { %v3222_v20 = vpop.f32.mrf.mxu0  ;;  %v3224_v24 = vpop.f32.mrf.mxu1 }
  0xa3   :  { %v3226_v25 = vpop.f32.mrf.mxu2 }
  0xa4   :  { %2373 = vmatmul.msk.f32.gmra.mxu0 %vm160_vm3, %v808_v19  ;;  %2381 = vmatmul.msk.f32.gmra.mxu1 %vm160_vm3, %v809_v22 }
  0xa9   :  { %v3230_v27 = vpop.f32.mrf.mxu3  ;;  %v3232_v28 = vpop.f32.mrf.mxu0 }
  0xaa   :  { %v3234_v30 = vpop.f32.mrf.mxu1  ;;  %v349_v36 = vadd.f32 %v3230_v27, %v3212_v13 }
  0xab   :  { %v3236_v11 = vpop.f32.mrf.mxu2 }
  0xac   :  { %2374 = vmatmul.msk.f32.gmra.mxu0 %vm160_vm3, %v809_v22  ;;  %2382 = vmatmul.msk.f32.gmra.mxu1 %vm160_vm3, %v810_v29  ;;  %v311_v26 = vadd.f32 %v3236_v11, %v3210_v6 }
  0xb1   :  { %v3240_v31 = vpop.f32.mrf.mxu3  ;;  %v3242_v32 = vpop.f32.mrf.mxu0 }
  0xb2   :  { %v3244_v33 = vpop.f32.mrf.mxu1  ;;  %v352_v34 = vadd.f32 %v3240_v31, %v3218_v10 }
  0xb3   :  { %v3253_v57 = vpop.f32.mrf.mxu2 }
  0xb4   :  { %2375 = vmatmul.msk.f32.gmra.mxu0 %vm160_vm3, %v810_v29  ;;  %v314_v6 = vadd.f32 %v3253_v57, %v3216_v52 }
  0xb9   :  { %v3255_v37 = vpop.f32.mrf.mxu3  ;;  %v3257_v38 = vpop.f32.mrf.mxu0 }
  0xba   :  { %v3259_v40 = vpop.f32.mrf.mxu1  ;;  %v355_v31 = vadd.f32 %v3255_v37, %v3224_v24 }
  0xbb   :  { %v3267_v42 = vpop.f32.mrf.mxu2 }
  0xbc   :  { %v317_v24 = vadd.f32 %v3267_v42, %v3222_v20 }
  0xc1   :  { %v3269_v44 = vpop.f32.mrf.mxu0  ;;  %v3271_v39 = vpop.f32.mrf.mxu3 }
  0xc2   :  { %v522_v45 = vpop.f32.mrf.mxu1 }
  0xc3   :  { %v3282_v50 = vpop.f32.mrf.mxu2  ;;  %v544_v59 = vadd.f32 %v522_v45, %v349_v36 }
  0xc9   :  { %v484_v53 = vpop.f32.mrf.mxu0  ;;  %v3286_v55 = vpop.f32.mrf.mxu3 }
  0xca   :  { %v3284_v48 = vpop.f32.mrf.mxu1  ;;  %v543_v27 = vadd.f32 %v484_v53, %v311_v26 }
  0xcb   :  { %v3304_v56 = vpop.f32.mrf.mxu2  ;;  %v546_v45 = vadd.f32 %v3284_v48, %v352_v34 }
  0xd1   :  { %v3300_v12 = vpop.f32.mrf.mxu0  ;;  %v3312_v9 = vpop.f32.mrf.mxu3 }
  0xd2   :  { %v3302_v62 = vpop.f32.mrf.mxu1 }
  0xd3   :  { %v3324_v7 = vpop.f32.mrf.mxu2  ;;  %v548_v18 = vadd.f32 %v3302_v62, %v355_v31 }
  0xd9   :  { %v3314_v16 = vpop.f32.mrf.mxu0  ;;  %v3329_v63 = vpop.f32.mrf.mxu3 }
  0xda   :  { %v3316_v8 = vpop.f32.mrf.mxu1 }
  0xdb   :  { %v3338_v49 = vpop.f32.mrf.mxu2 }
  0xe1   :  { %v3331_v21 = vpop.f32.mrf.mxu0  ;;  %v710_v43 = vpop.f32.mrf.mxu3 }
  0xe2   :  { %v3333_v51 = vpop.f32.mrf.mxu1  ;;  %v732_v23 = vadd.f32 %v710_v43, %v544_v59  ;;  %v545_v43 = vadd.f32 %v3300_v12, %v314_v6 }
  0xe3   :  { %v672_v19 = vpop.f32.mrf.mxu2 }
  0xe4   :  { %v731_v1 = vadd.f32 %v672_v19, %v543_v27 }
  0xe9   :  { %v3349_v5 = vpop.f32.mrf.mxu0  ;;  %v713_v35 = vpop.f32.mrf.mxu3 }
  0xea   :  { %v3351_v54 = vpop.f32.mrf.mxu1  ;;  %v734_v14 = vadd.f32 %v713_v35, %v546_v45 }
  0xeb   :  { %v675_v60 = vpop.f32.mrf.mxu2 }
  0xec   :  { %v733_v19 = vadd.f32 %v675_v60, %v545_v43  ;;  %v547_v60 = vadd.f32 %v3314_v16, %v317_v24  ;;  %v2438_v43 = vld [vmem:[%s4378_s4 + $0x150] sm:$0xf] }
  0xed   :  { %2440 = vmatpush.msk.msrb.mxu0 %vm1344_vm11, %v2438_v43  ;;  %v1235_v43 = vld [vmem:[%s4378_s4 + $0x30] sm:$0xff] }
  0xf1   :  { %v3356_v22 = vpop.f32.mrf.mxu0  ;;  %v716_v0 = vpop.f32.mrf.mxu3 }
  0xf2   :  { %v3358_v29 = vpop.f32.mrf.mxu1  ;;  %v736_v52 = vadd.f32 %v716_v0, %v548_v18  ;;  %v2439_v18 = vld [vmem:[%s4378_s4 + $0x158] sm:$0xf] }
  0xf3   :  { %v678_v53 = vpop.f32.mrf.mxu2  ;;  %2444 = vmatpush.msk.msrb.mxu1 %vm1344_vm11, %v2439_v18  ;;  %v1236_v18 = vld [vmem:[%s4378_s4 + $0x38] sm:$0xff] }
  0xf4   :  { %v735_v34 = vadd.f32 %v678_v53, %v547_v60 }
  0xf9   :  { %v3365_v46 = vpop.f32.mrf.mxu0  ;;  %v719_v35 = vpop.f32.mrf.mxu3 }
  0xfa   :  { %v880_v58 = vpop.f32.mrf.mxu1 }
  0xfb   :  { %v902_v61 = vadd.f32 %v880_v58, %v732_v23  ;;  %v358_v58 = vadd.f32 %v3271_v39, %v3234_v30  ;;  %v681_v26 = vpop.f32.mrf.mxu2  ;;  %v320_v39 = vadd.f32 %v3282_v50, %v3232_v28 }
  0xfd   :  { %v922_v13 = vadd.f32 %v3367_v47, %v902_v61  ;;  %v550_v61 = vadd.f32 %v3316_v8, %v358_v58 }
  0xff   :  { %2614 = vtanh.f32 %v922_v13  ;;  %v738_v20 = vadd.f32 %v719_v35, %v550_v61 }
 0x101   :  { %v842_v2 = vpop.f32.mrf.mxu0  ;;  %v722_v13 = vpop.f32.mrf.mxu3 }
 0x102   :  { %v901_v3 = vadd.f32 %v842_v2, %v731_v1  ;;  %v883_v17 = vpop.f32.mrf.mxu1  ;;  %v549_v2 = vadd.f32 %v3331_v21, %v320_v39  ;;  %v2434_v39 = vld [vmem:[%s4378_s4 + $0x130] sm:$0xff] }
 0x103   :  { %v904_v4 = vadd.f32 %v883_v17, %v734_v14  ;;  %v361_v14 = vadd.f32 %v3286_v55, %v3244_v33  ;;  %v323_v33 = vadd.f32 %v3304_v56, %v3242_v32 }
 0x104   :  { %v921_v10 = vadd.f32 %v3375_v15, %v901_v3  ;;  %v737_v17 = vadd.f32 %v681_v26, %v549_v2  ;;  %v1245_v2 = vld [vmem:[%s4378_s4 + $0x80] sm:$0xff] }
 0x105   :  { %v2615_v11 = vpop.eup %2614  ;;  %v924_v48 = vadd.f32 %v3367_v47, %v904_v4  ;;  %v552_v3 = vadd.f32 %v3333_v51, %v361_v14  ;;  %v684_v4 = vpop.f32.mrf.mxu2  ;;  %v551_v32 = vadd.f32 %v3349_v5, %v323_v33  ;;  %v326_v5 = vadd.f32 %v3324_v7, %v3257_v38  ;;  %v1247_v14 = vld [vmem:[%s4378_s4 + $0x90] sm:$0xff] }
 0x106   :  { %2616 = vtanh.f32 %v921_v10  ;;  %2383 = vmatmul.msk.f32.vlgmr.msra.gmra.mxu3 %vm970_vm10, %v2615_v11  ;;  %v1239_v33 = vld [vmem:[%s4378_s4 + $0x50] sm:$0xff] }
 0x107   :  { %2618 = vtanh.f32 %v924_v48  ;;  %v740_v28 = vadd.f32 %v722_v13, %v552_v3  ;;  %v364_v48 = vadd.f32 %v3312_v9, %v3259_v40  ;;  %v739_v56 = vadd.f32 %v684_v4, %v551_v32  ;;  %v1246_v3 = vld [vmem:[%s4378_s4 + $0x88] sm:$0xff]  ;;  %v1244_v4 = vld [vmem:[%s4378_s4 + $0x78] sm:$0xff]  ;;  %v2426_v32 = vld [vmem:[%s4378_s4 + $0xf0] sm:$0xff] }
 0x109   :  { %v845_v57 = vpop.f32.mrf.mxu0  ;;  %v725_v55 = vpop.f32.mrf.mxu3  ;;  %v554_v40 = vadd.f32 %v3351_v54, %v364_v48  ;;  %v367_v54 = vadd.f32 %v3329_v63, %v3226_v25  ;;  %v329_v25 = vadd.f32 %v3338_v49, %v3269_v44  ;;  %v2428_v48 = vld [vmem:[%s4378_s4 + $0x100] sm:$0xff] }
 0x10a   :  { %v903_v36 = vadd.f32 %v845_v57, %v733_v19  ;;  %v886_v41 = vpop.f32.mrf.mxu1 }
 0x10b   :  { %v906_v59 = vadd.f32 %v886_v41, %v736_v52  ;;  %v742_v9 = vadd.f32 %v725_v55, %v554_v40  ;;  %v556_v58 = vadd.f32 %v3358_v29, %v367_v54  ;;  %v555_v29 = vadd.f32 %v3365_v46, %v329_v25  ;;  %v2436_v46 = vld [vmem:[%s4378_s4 + $0x140] sm:$0xff]  ;;  %v1240_v55 = vld [vmem:[%s4378_s4 + $0x58] sm:$0xff] }
 0x10c   :  { %v2617_v23 = vpop.eup %2616  ;;  %v923_v37 = vadd.f32 %v3375_v15, %v903_v36  ;;  %1357 = vmatpush.msrb.mxu0 %v2436_v46  ;;  %v2427_v40 = vld [vmem:[%s4378_s4 + $0xf8] sm:$0xff]  ;;  %v2420_v54 = vld [vmem:[%s4378_s4 + $0xc0] sm:$0xff] }
 0x10d   :  { %v2619_v12 = vpop.eup %2618  ;;  %v926_v62 = vadd.f32 %v3367_v47, %v906_v59  ;;  %1008 = vmatmul.f32.vlgmr.msrb.gmra.mxu2 %v2617_v23  ;;  %v687_v57 = vpop.f32.mrf.mxu2 }
 0x10e   :  { %2620 = vtanh.f32 %v923_v37  ;;  %2384 = vmatmul.msk.f32.gmra.mxu3 %vm970_vm10, %v2619_v12  ;;  %v553_v37 = vadd.f32 %v3356_v22, %v326_v5  ;;  %1358 = vmatpush.msrb.mxu0 %v2434_v39  ;;  %v1229_v5 = vld [vmem:[%s4378_s4] sm:$0xff] }
 0x10f   :  { %2622 = vtanh.f32 %v926_v62 }
 0x110   :  { %v741_v62 = vadd.f32 %v687_v57, %v553_v37  ;;  %v1232_v57 = vld [vmem:[%s4378_s4 + $0x18] sm:$0xff]  ;;  %v2418_v37 = vld [vmem:[%s4378_s4 + $0xb0] sm:$0xff] }
 0x111   :  { %v848_v42 = vpop.f32.mrf.mxu0  ;;  %v728_v12 = vpop.f32.mrf.mxu3 }
 0x112   :  { %v905_v27 = vadd.f32 %v848_v42, %v735_v34  ;;  %v889_v0 = vpop.f32.mrf.mxu1  ;;  %v744_v38 = vadd.f32 %v728_v12, %v556_v58  ;;  %v2419_v12 = vld [vmem:[%s4378_s4 + $0xb8] sm:$0xff] }
 0x113   :  { %v908_v45 = vadd.f32 %v889_v0, %v738_v20 }
 0x114   :  { %v2621_v30 = vpop.eup %2620  ;;  %v925_v16 = vadd.f32 %v3375_v15, %v905_v27 }
 0x115   :  { %v2623_v1 = vpop.eup %2622  ;;  %v928_v8 = vadd.f32 %v3367_v47, %v908_v45  ;;  %1011 = vmatmul.f32.gmra.mxu2 %v2621_v30  ;;  %v690_v20 = vpop.f32.mrf.mxu2 }
 0x116   :  { %2624 = vtanh.f32 %v925_v16  ;;  %2385 = vmatmul.msk.f32.gmra.mxu3 %vm970_vm10, %v2623_v1  ;;  %v743_v13 = vadd.f32 %v690_v20, %v555_v29  ;;  %v1249_v16 = vld [vmem:[%s4378_s4 + $0xa0] sm:$0xf]  ;;  %v1250_v1 = vld [vmem:[%s4378_s4 + $0xa8] sm:$0xf] }
 0x117   :  { %2626 = vtanh.f32 %v928_v8  ;;  %2448 = vmatpush.msk.msra.mxu2 %vm1344_vm11, %v1249_v16  ;;  %2452 = vmatpush.msk.msrb.mxu3 %vm1344_vm11, %v1250_v1  ;;  %v1248_v8 = vld [vmem:[%s4378_s4 + $0x98] sm:$0xff]  ;;  %v2506_v16 = vld [vmem:[%s4378_s4 + $0x2b0] sm:$0xf] }
 0x118   :  { %v2507_v1 = vld [vmem:[%s4378_s4 + $0x2b8] sm:$0xf] }
 0x119   :  { %v851_v50 = vpop.f32.mrf.mxu0  ;;  %1442 = vmatpush.msra.mxu2 %v1247_v14  ;;  %1468 = vmatpush.msrb.mxu3 %v1248_v8 }
 0x11a   :  { %v907_v6 = vadd.f32 %v851_v50, %v737_v17  ;;  %v892_v10 = vpop.f32.mrf.mxu1  ;;  %v1243_v17 = vld [vmem:[%s4378_s4 + $0x70] sm:$0xff]  ;;  %v2433_v50 = vld [vmem:[%s4378_s4 + $0x128] sm:$0xff] }
 0x11b   :  { %v910_v11 = vadd.f32 %v892_v10, %v740_v28  ;;  %1443 = vmatpush.msra.mxu2 %v1245_v2  ;;  %1469 = vmatpush.msrb.mxu3 %v1246_v3  ;;  %v2432_v28 = vld [vmem:[%s4378_s4 + $0x120] sm:$0xff]  ;;  %v2431_v10 = vld [vmem:[%s4378_s4 + $0x118] sm:$0xff] }
 0x11c   :  { %v2625_v31 = vpop.eup %2624  ;;  %v927_v21 = vadd.f32 %v3375_v15, %v907_v6  ;;  %v2430_v6 = vld [vmem:[%s4378_s4 + $0x110] sm:$0xff]  ;;  %1359 = vmatpush.msrb.mxu0 %v2432_v28 }
 0x11d   :  { %v2627_v53 = vpop.eup %2626  ;;  %v930_v51 = vadd.f32 %v3367_v47, %v910_v11  ;;  %1014 = vmatmul.f32.gmra.mxu2 %v2625_v31  ;;  %1470 = vmatpush.msrb.mxu3 %v1244_v4  ;;  %v1241_v11 = vld [vmem:[%s4378_s4 + $0x60] sm:$0xff]  ;;  %v1242_v31 = vld [vmem:[%s4378_s4 + $0x68] sm:$0xff] }
 0x11e   :  { %2628 = vtanh.f32 %v927_v21  ;;  %2386 = vmatmul.msk.f32.gmra.mxu3 %vm970_vm10, %v2627_v53  ;;  %1444 = vmatpush.msra.mxu2 %v1243_v17  ;;  %v1237_v21 = vld [vmem:[%s4378_s4 + $0x40] sm:$0xff]  ;;  %v1238_v53 = vld [vmem:[%s4378_s4 + $0x48] sm:$0xff] }
 0x11f   :  { %2630 = vtanh.f32 %v930_v51  ;;  %1471 = vmatpush.msrb.mxu3 %v1242_v31  ;;  %1360 = vmatpush.msrb.mxu0 %v2430_v6  ;;  %v2429_v51 = vld [vmem:[%s4378_s4 + $0x108] sm:$0xff] }
 0x120   :  { %1445 = vmatpush.msra.mxu2 %v1241_v11  ;;  %v2505_v6 = vld [vmem:[%s4378_s4 + $0x2a8] sm:$0xff] }
 0x121   :  { %v854_v19 = vpop.f32.mrf.mxu0  ;;  %1472 = vmatpush.msrb.mxu3 %v1240_v55  ;;  %1361 = vmatpush.msrb.mxu0 %v2428_v48  ;;  %v2476_v55 = vld [vmem:[%s4378_s4 + $0x200] sm:$0xf] }
 0x122   :  { %v909_v35 = vadd.f32 %v854_v19, %v739_v56  ;;  %v895_v52 = vpop.f32.mrf.mxu1  ;;  %1446 = vmatpush.msra.mxu2 %v1239_v33  ;;  %v1233_v56 = vld [vmem:[%s4378_s4 + $0x20] sm:$0xff] }
 0x123   :  { %v912_v36 = vadd.f32 %v895_v52, %v742_v9  ;;  %1473 = vmatpush.msrb.mxu3 %v1238_v53  ;;  %1362 = vmatpush.msrb.mxu0 %v2426_v32  ;;  %v1234_v9 = vld [vmem:[%s4378_s4 + $0x28] sm:$0xff]  ;;  %v2424_v19 = vld [vmem:[%s4378_s4 + $0xe0] sm:$0xff]  ;;  %v1231_v52 = vld [vmem:[%s4378_s4 + $0x10] sm:$0xff] }
 0x124   :  { %v2629_v41 = vpop.eup %2628  ;;  %v929_v59 = vadd.f32 %v3375_v15, %v909_v35  ;;  %1447 = vmatpush.msra.mxu2 %v1237_v21  ;;  %v2425_v35 = vld [vmem:[%s4378_s4 + $0xe8] sm:$0xff]  ;;  %v2502_v53 = vld [vmem:[%s4378_s4 + $0x290] sm:$0xff] }
 0x125   :  { %v2631_v23 = vpop.eup %2630  ;;  %v932_v24 = vadd.f32 %v3367_v47, %v912_v36  ;;  %1017 = vmatmul.f32.gmra.mxu2 %v2629_v41  ;;  %1474 = vmatpush.msrb.mxu3 %v1236_v18  ;;  %v2422_v36 = vld [vmem:[%s4378_s4 + $0xd0] sm:$0xff]  ;;  %v2423_v41 = vld [vmem:[%s4378_s4 + $0xd8] sm:$0xff]  ;;  %v2477_v21 = vld [vmem:[%s4378_s4 + $0x208] sm:$0xf] }
 0x126   :  { %2632 = vtanh.f32 %v929_v59  ;;  %2387 = vmatmul.msk.f32.gmra.mxu3 %vm970_vm10, %v2631_v23  ;;  %1448 = vmatpush.msra.mxu2 %v1235_v43  ;;  %v1230_v23 = vld [vmem:[%s4378_s4 + $0x8] sm:$0xff]  ;;  %v2474_v32 = vld [vmem:[%s4378_s4 + $0x1f0] sm:$0xff] }
 0x127   :  { %2634 = vtanh.f32 %v932_v24  ;;  %1475 = vmatpush.msrb.mxu3 %v1234_v9  ;;  %1363 = vmatpush.msrb.mxu0 %v2424_v19  ;;  %v2421_v24 = vld [vmem:[%s4378_s4 + $0xc8] sm:$0xff] }
 0x128   :  { %1449 = vmatpush.msra.mxu2 %v1233_v56  ;;  %v2503_v56 = vld [vmem:[%s4378_s4 + $0x298] sm:$0xff] }
 0x129   :  { %v857_v7 = vpop.f32.mrf.mxu0  ;;  %1476 = vmatpush.msrb.mxu3 %v1232_v57  ;;  %1364 = vmatpush.msrb.mxu0 %v2422_v36  ;;  %v2472_v36 = vld [vmem:[%s4378_s4 + $0x1e0] sm:$0xff] }
 0x12a   :  { %v911_v60 = vadd.f32 %v857_v7, %v741_v62  ;;  %v898_v61 = vpop.f32.mrf.mxu1  ;;  %1450 = vmatpush.msra.mxu2 %v1231_v52 }
 0x12b   :  { %v914_v26 = vadd.f32 %v898_v61, %v744_v38  ;;  %1477 = vmatpush.msrb.mxu3 %v1230_v23  ;;  %1365 = vmatpush.msrb.mxu0 %v2420_v54  ;;  %v2501_v23 = vld [vmem:[%s4378_s4 + $0x288] sm:$0xff]  ;;  %v2470_v54 = vld [vmem:[%s4378_s4 + $0x1d0] sm:$0xff] }
 0x12c   :  { %v2633_v34 = vpop.eup %2632  ;;  %v931_v63 = vadd.f32 %v3375_v15, %v911_v60  ;;  %1451 = vmatpush.msra.mxu2 %v1229_v5  ;;  %v2500_v5 = vld [vmem:[%s4378_s4 + $0x280] sm:$0xff] }
 0x12d   :  { %v2635_v22 = vpop.eup %2634  ;;  %v934_v42 = vadd.f32 %v3367_v47, %v914_v26  ;;  %1020 = vmatmul.f32.gmra.mxu2 %v2633_v34  ;;  %v2437_v47 = vld [vmem:[%s4378_s4 + $0x148] sm:$0xff]  ;;  %1366 = vmatpush.msrb.mxu0 %v2418_v37 }
 0x12e   :  { %2636 = vtanh.f32 %v931_v63  ;;  %2388 = vmatmul.msk.f32.gmra.mxu3 %vm970_vm10, %v2635_v22  ;;  %1383 = vmatpush.msrb.mxu1 %v2437_v47 }
 0x12f   :  { %2638 = vtanh.f32 %v934_v42  ;;  %2508 = vmatpush.msk.msrb.mxu2 %vm1344_vm11, %v2506_v16  ;;  %2512 = vmatpush.msk.msra.mxu3 %vm1344_vm11, %v2507_v1 }
 0x130   :  { %2478 = vmatpush.msk.msra.mxu0 %vm1344_vm11, %v2476_v55  ;;  %v2490_v55 = vld [vmem:[%s4378_s4 + $0x230] sm:$0xff] }
 0x131   :  { %v860_v27 = vpop.f32.mrf.mxu0  ;;  %1690 = vmatpush.msra.mxu3 %v2505_v6 }
 0x132   :  { %v913_v0 = vadd.f32 %v860_v27, %v743_v13  ;;  %1550 = vmatpush.msra.mxu0 %v2474_v32 }
 0x133   :  { %1691 = vmatpush.msra.mxu3 %v2503_v56 }
 0x134   :  { %v2637_v45 = vpop.eup %2636  ;;  %v933_v30 = vadd.f32 %v3375_v15, %v913_v0  ;;  %v2435_v15 = vld [vmem:[%s4378_s4 + $0x138] sm:$0xff]  ;;  %1551 = vmatpush.msra.mxu0 %v2472_v36  ;;  %v2458_v36 = vld [vmem:[%s4378_s4 + $0x170] sm:$0xff] }
 0x135   :  { %v2639_v44 = vpop.eup %2638  ;;  %1023 = vmatmul.f32.gmra.mxu2 %v2637_v45  ;;  %1384 = vmatpush.msrb.mxu1 %v2435_v15 }
 0x136   :  { %2640 = vtanh.f32 %v933_v30  ;;  %2389 = vmatmul.msk.f32.gmra.mxu3 %vm970_vm10, %v2639_v44  ;;  %1552 = vmatpush.msra.mxu0 %v2470_v54 }
 0x137   :  { %1385 = vmatpush.msrb.mxu1 %v2433_v50  ;;  %v2504_v50 = vld [vmem:[%s4378_s4 + $0x2a0] sm:$0xff]  ;;  %1692 = vmatpush.msra.mxu3 %v2501_v23 }
 0x138   :  { %1664 = vmatpush.msrb.mxu2 %v2504_v50 }
 0x139   :  { %1386 = vmatpush.msrb.mxu1 %v2431_v10 }
 0x13a   :  { %1665 = vmatpush.msrb.mxu2 %v2502_v53 }
 0x13b   :  { %1387 = vmatpush.msrb.mxu1 %v2429_v51 }
 0x13c   :  { %v2641_v49 = vpop.eup %2640  ;;  %1666 = vmatpush.msrb.mxu2 %v2500_v5 }
 0x13d   :  { %1026 = vmatmul.f32.gmra.mxu2 %v2641_v49  ;;  %1388 = vmatpush.msrb.mxu1 %v2427_v40  ;;  %v2475_v40 = vld [vmem:[%s4378_s4 + $0x1f8] sm:$0xff] }
 0x13f   :  { %1389 = vmatpush.msrb.mxu1 %v2425_v35 }
 0x141   :  { %1390 = vmatpush.msrb.mxu1 %v2423_v41  ;;  %v2473_v41 = vld [vmem:[%s4378_s4 + $0x1e8] sm:$0xff] }
 0x143   :  { %1391 = vmatpush.msrb.mxu1 %v2421_v24 }
 0x145   :  { %1392 = vmatpush.msrb.mxu1 %v2419_v12 }
 0x147   :  { %2482 = vmatpush.msk.msra.mxu1 %vm1344_vm11, %v2477_v21  ;;  %v2491_v21 = vld [vmem:[%s4378_s4 + $0x238] sm:$0xff] }
 0x149   :  { %1576 = vmatpush.msra.mxu1 %v2475_v40 }
 0x14b   :  { %1577 = vmatpush.msra.mxu1 %v2473_v41  ;;  %v2459_v41 = vld [vmem:[%s4378_s4 + $0x178] sm:$0xff] }
 0x189   :  { %v1047_v59 = vpop.f32.mrf.mxu3 }
 0x190   :  { %v1009_v58 = vpop.f32.mrf.mxu2 }
 0x191   :  { %v1048_v62 = vadd.f32 %v1047_v59, %v1009_v58  ;;  %v1050_v38 = vpop.f32.mrf.mxu3  ;;  %v2471_v58 = vld [vmem:[%s4378_s4 + $0x1d8] sm:$0xff] }
 0x192   :  { %1578 = vmatpush.msra.mxu1 %v2471_v58 }
 0x193   :  { %v1075_v7 = vrot.slane %v1048_v62, 2  ;;  %v1076_v60 = vrot.slane %v1048_v62, 4  ;;  %v1077_v61 = vrot.slane %v1048_v62, 6  ;;  %v2390_v26 = vrot.slane %v1048_v62, 9 }
 0x195   :  { %v2391_v34 = vrot.slane %v1075_v7, 9  ;;  %v2392_v25 = vrot.slane %v1076_v60, 9  ;;  %v2393_v63 = vrot.slane %v1077_v61, 9  ;;  %v1201_v22 = vadd.f32 %v2390_v26, %v1048_v62  ;;  %v2498_v62 = vld [vmem:[%s4378_s4 + $0x270] sm:$0xff] }
 0x196   :  { %1667 = vmatpush.msrb.mxu2 %v2498_v62 }
 0x197   :  { %v1202_v20 = vadd.f32 %v2391_v34, %v1075_v7  ;;  %v1203_v42 = vadd.f32 %v2392_v25, %v1076_v60  ;;  %v1204_v13 = vadd.f32 %v2393_v63, %v1077_v61  ;;  %v1405_v0 = vperm.slane %v1201_v22, 0  ;;  %v2496_v60 = vld [vmem:[%s4378_s4 + $0x260] sm:$0xff]  ;;  %v2497_v63 = vld [vmem:[%s4378_s4 + $0x268] sm:$0xff] }
 0x198   :  { %v1012_v29 = vpop.f32.mrf.mxu2  ;;  %1668 = vmatpush.msrb.mxu2 %v2496_v60  ;;  %v2456_v60 = vld [vmem:[%s4378_s4 + $0x160] sm:$0xff] }
 0x199   :  { %v1294_v27 = vperm.slane %v1202_v20, 0  ;;  %v1051_v45 = vadd.f32 %v1050_v38, %v1012_v29  ;;  %v1053_v30 = vpop.f32.mrf.mxu3  ;;  %v3566_v44 = vperm.slane %v1203_v42, 0  ;;  %v3575_v14 = vperm.slane %v1204_v13, 0  ;;  %v2499_v38 = vld [vmem:[%s4378_s4 + $0x278] sm:$0xff]  ;;  %v2468_v20 = vld [vmem:[%s4378_s4 + $0x1c0] sm:$0xff]  ;;  %v2469_v42 = vld [vmem:[%s4378_s4 + $0x1c8] sm:$0xff] }
 0x19a   :  { %1693 = vmatpush.msra.mxu3 %v2499_v38  ;;  %1553 = vmatpush.msra.mxu0 %v2468_v20 }
 0x19b   :  { %v1407_v49 = vsel %vm1314_vm12, %v1294_v27, %v1405_v0  ;;  %v1078_v46 = vrot.slane %v1051_v45, 2  ;;  %v1079_v47 = vrot.slane %v1051_v45, 4  ;;  %v1080_v39 = vrot.slane %v1051_v45, 6  ;;  %1579 = vmatpush.msra.mxu1 %v2469_v42  ;;  %v2536_v42 = vld [vmem:[%s4378_s4 + $0x360] sm:$0xf] }
 0x19c   :  { %v2394_v15 = vrot.slane %v1051_v45, 9  ;;  %v1408_v4 = vsel %vm1316_vm13, %v3566_v44, %v1407_v49  ;;  %v1315_v28 = vsel %vm1314_vm12, %v3566_v44, %v1294_v27  ;;  %1694 = vmatpush.msra.mxu3 %v2497_v63  ;;  %v2467_v49 = vld [vmem:[%s4378_s4 + $0x1b8] sm:$0xff] }
 0x19d   :  { %v2395_v8 = vrot.slane %v1078_v46, 9  ;;  %v2396_v2 = vrot.slane %v1079_v47, 9  ;;  %v2397_v3 = vrot.slane %v1080_v39, 9  ;;  %v1409_v43 = vsel %vm1318_vm14, %v3575_v14, %v1408_v4  ;;  %1580 = vmatpush.msra.mxu1 %v2467_v49  ;;  %v2492_v4 = vld [vmem:[%s4378_s4 + $0x240] sm:$0xff] }
 0x19e   :  { %v1205_v17 = vadd.f32 %v2394_v15, %v1051_v45  ;;  %v1317_v18 = vsel %vm1316_vm13, %v3575_v14, %v1315_v28  ;;  %v2495_v15 = vld [vmem:[%s4378_s4 + $0x258] sm:$0xff]  ;;  %v2493_v28 = vld [vmem:[%s4378_s4 + $0x248] sm:$0xff] }
 0x19f   :  { %v1206_v10 = vadd.f32 %v2395_v8, %v1078_v46  ;;  %v1207_v11 = vadd.f32 %v2396_v2, %v1079_v47  ;;  %v1208_v9 = vadd.f32 %v2397_v3, %v1080_v39  ;;  %v2494_v39 = vld [vmem:[%s4378_s4 + $0x250] sm:$0xff]  ;;  %v2464_v8 = vld [vmem:[%s4378_s4 + $0x1a0] sm:$0xff]  ;;  %v2465_v2 = vld [vmem:[%s4378_s4 + $0x1a8] sm:$0xff]  ;;  %1695 = vmatpush.msra.mxu3 %v2495_v15 }
 0x1a0   :  { %v3589_v31 = vperm.slane %v1205_v17, 0  ;;  %v1015_v33 = vpop.f32.mrf.mxu2  ;;  %1669 = vmatpush.msrb.mxu2 %v2494_v39  ;;  %1581 = vmatpush.msra.mxu1 %v2465_v2  ;;  %v2535_v39 = vld [vmem:[%s4378_s4 + $0x358] sm:$0xff] }
 0x1a1   :  { %v3600_v48 = vperm.slane %v1206_v10, 0  ;;  %v3602_v51 = vadd.f32 %v1053_v30, %v1015_v33  ;;  %v3619_v19 = vperm.slane %v1207_v11, 0  ;;  %v1056_v35 = vpop.f32.mrf.mxu3  ;;  %v3659_v61 = vperm.slane %v1208_v9, 0  ;;  %v2466_v30 = vld [vmem:[%s4378_s4 + $0x1b0] sm:$0xff]  ;;  %v2463_v11 = vld [vmem:[%s4378_s4 + $0x198] sm:$0xff]  ;;  %1696 = vmatpush.msra.mxu3 %v2493_v28  ;;  %v2488_v9 = vld [vmem:[%s4378_s4 + $0x220] sm:$0xff] }
 0x1a2   :  { %v1410_v52 = vsel %vm558_vm8, %v3589_v31, %v1409_v43  ;;  %v1319_v57 = vsel %vm1318_vm14, %v3589_v31, %v1317_v18  ;;  %1554 = vmatpush.msra.mxu0 %v2466_v30  ;;  %v2462_v10 = vld [vmem:[%s4378_s4 + $0x190] sm:$0xff]  ;;  %1670 = vmatpush.msrb.mxu2 %v2492_v4  ;;  %v2460_v43 = vld [vmem:[%s4378_s4 + $0x180] sm:$0xff]  ;;  %v2461_v18 = vld [vmem:[%s4378_s4 + $0x188] sm:$0xff]  ;;  %v1629_v5 = vsel %vm1314_vm12, %v3589_v31, %v3575_v14 }
 0x1a3   :  { %v2398_v59 = vrot.slane %v3602_v51, 9  ;;  %v1081_v24 = vrot.slane %v3602_v51, 2  ;;  %v1411_v37 = vsel %vm1321_vm15, %v3600_v48, %v1410_v52  ;;  %v1320_v12 = vsel %vm558_vm8, %v3600_v48, %v1319_v57  ;;  %1582 = vmatpush.msra.mxu1 %v2463_v11  ;;  %1697 = vmatpush.msra.mxu3 %v2491_v21  ;;  %v2533_v21 = vld [vmem:[%s4378_s4 + $0x348] sm:$0xff] }
 0x1a4   :  { %v1082_v26 = vrot.slane %v3602_v51, 4  ;;  %v1412_v34 = vsel %vm1323_vm0, %v3619_v19, %v1411_v37  ;;  %v1322_v25 = vsel %vm1321_vm15, %v3619_v19, %v1320_v12  ;;  %1555 = vmatpush.msra.mxu0 %v2464_v8  ;;  %v1743_v52 = vsel %vm1314_vm12, %v3600_v48, %v3589_v31  ;;  %1671 = vmatpush.msrb.mxu2 %v2490_v55  ;;  %v2487_v37 = vld [vmem:[%s4378_s4 + $0x218] sm:$0xff]  ;;  %v2532_v55 = vld [vmem:[%s4378_s4 + $0x340] sm:$0xff] }
 0x1a5   :  { %v1209_v7 = vadd.f32 %v2398_v59, %v3602_v51  ;;  %v2399_v29 = vrot.slane %v1081_v24, 9  ;;  %v1413_v13 = vsel %vm1325_vm1, %v3659_v61, %v1412_v34  ;;  %v1324_v45 = vsel %vm1323_vm0, %v3659_v61, %v1322_v25  ;;  %1583 = vmatpush.msra.mxu1 %v2461_v18 }
 0x1a6   :  { %2449 = vmatmul.msk.f32.vlgmr.msra.gmra.mxu2 %vm1337_vm2, %v1413_v13  ;;  %2453 = vmatmul.msk.f32.vlgmr.msrb.gmra.mxu3 %vm1337_vm2, %v1413_v13  ;;  %v2400_v46 = vrot.slane %v1082_v26, 9  ;;  %v1083_v59 = vrot.slane %v3602_v51, 6  ;;  %v1744_v12 = vsel %vm1316_vm13, %v3619_v19, %v1743_v52  ;;  %v3775_v34 = vsel %vm1314_vm12, %v3575_v14, %v3566_v44 }
 0x1a7   :  { %v3669_v22 = vperm.slane %v1209_v7, 0  ;;  %v1210_v3 = vadd.f32 %v2399_v29, %v1081_v24  ;;  %1556 = vmatpush.msra.mxu0 %v2462_v10  ;;  %v2486_v24 = vld [vmem:[%s4378_s4 + $0x210] sm:$0xff]  ;;  %1672 = vmatpush.msrb.mxu2 %v2488_v9  ;;  %v2537_v29 = vld [vmem:[%s4378_s4 + $0x368] sm:$0xf]  ;;  %v1745_v15 = vsel %vm1318_vm14, %v3659_v61, %v1744_v12 }
 0x1a8   :  { %v1018_v27 = vpop.f32.mrf.mxu2  ;;  %v1211_v33 = vadd.f32 %v2400_v46, %v1082_v26  ;;  %v2457_v26 = vld [vmem:[%s4378_s4 + $0x168] sm:$0xff]  ;;  %1584 = vmatpush.msra.mxu1 %v2459_v41  ;;  %v1630_v46 = vsel %vm1316_vm13, %v3600_v48, %v1629_v5 }
 0x1a9   :  { %v3681_v0 = vadd.f32 %v1056_v35, %v1018_v27  ;;  %v1326_v47 = vsel %vm1325_vm1, %v3669_v22, %v1324_v45  ;;  %v1059_v17 = vpop.f32.mrf.mxu3  ;;  %v3733_v32 = vperm.slane %v1210_v3, 0  ;;  %v2489_v35 = vld [vmem:[%s4378_s4 + $0x228] sm:$0xff]  ;;  %1557 = vmatpush.msra.mxu0 %v2460_v43  ;;  %1673 = vmatpush.msrb.mxu2 %v2486_v24  ;;  %v2401_v45 = vrot.slane %v1083_v59, 9 }
 0x1aa   :  { %2441 = vmatmul.msk.f32.vlgmr.msrb.gmra.mxu0 %vm1337_vm2, %v1326_v47  ;;  %2445 = vmatmul.msk.f32.vlgmr.msrb.gmra.mxu1 %vm1337_vm2, %v1326_v47  ;;  %v3756_v23 = vperm.slane %v1211_v33, 0  ;;  %v2534_v47 = vld [vmem:[%s4378_s4 + $0x350] sm:$0xff]  ;;  %v1631_v24 = vsel %vm1318_vm14, %v3619_v19, %v1630_v46  ;;  %v2529_v12 = vld [vmem:[%s4378_s4 + $0x328] sm:$0xff] }
 0x1ab   :  { %v1085_v16 = vrot.slane %v3681_v0, 4  ;;  %v1086_v1 = vrot.slane %v3681_v0, 6  ;;  %1698 = vmatpush.msra.mxu3 %v2489_v35  ;;  %v1084_v25 = vrot.slane %v3681_v0, 2  ;;  %v1414_v20 = vsel %vm1314_vm12, %v3733_v32, %v3669_v22  ;;  %1558 = vmatpush.msra.mxu0 %v2458_v36 }
 0x1ac   :  { %1585 = vmatpush.msra.mxu1 %v2457_v26  ;;  %v1327_v2 = vsel %vm1314_vm12, %v3756_v23, %v3733_v32  ;;  %v2402_v3 = vrot.slane %v3681_v0, 9 }
 0x1ad   :  { %v2404_v50 = vrot.slane %v1085_v16, 9  ;;  %v2405_v6 = vrot.slane %v1086_v1, 9  ;;  %1699 = vmatpush.msra.mxu3 %v2487_v37  ;;  %1559 = vmatpush.msra.mxu0 %v2456_v60  ;;  %v2528_v37 = vld [vmem:[%s4378_s4 + $0x320] sm:$0xff] }
 0x1ae   :  { %2542 = vmatpush.msk.msrb.mxu1 %vm1344_vm11, %v2537_v29  ;;  %v3850_v60 = vadd.f32 %v2402_v3, %v3681_v0  ;;  %v2526_v0 = vld [vmem:[%s4378_s4 + $0x310] sm:$0xff] }
 0x1af   :  { %v1215_v53 = vadd.f32 %v2404_v50, %v1085_v16  ;;  %v3735_v40 = vadd.f32 %v2405_v6, %v1086_v1  ;;  %2538 = vmatpush.msk.msrb.mxu0 %vm1344_vm11, %v2536_v42  ;;  %v1746_v50 = vsel %vm558_vm8, %v3669_v22, %v1745_v15  ;;  %v2524_v15 = vld [vmem:[%s4378_s4 + $0x300] sm:$0xff] }
 0x1b0   :  { %v1021_v56 = vpop.f32.mrf.mxu2  ;;  %1804 = vmatpush.msrb.mxu1 %v2535_v39  ;;  %v3835_v9 = vsel %vm1321_vm15, %v3733_v32, %v1746_v50 }
 0x1b1   :  { %v1060_v57 = vadd.f32 %v1059_v17, %v1021_v56  ;;  %v1406_v54 = vperm.slane %v1215_v53, 0  ;;  %v1304_v63 = vperm.slane %v3735_v40, 0  ;;  %v1062_v30 = vpop.f32.mrf.mxu3  ;;  %v2403_v17 = vrot.slane %v1084_v25, 9  ;;  %1778 = vmatpush.msrb.mxu0 %v2534_v47  ;;  %v2530_v40 = vld [vmem:[%s4378_s4 + $0x330] sm:$0xff]  ;;  %v2531_v56 = vld [vmem:[%s4378_s4 + $0x338] sm:$0xff] }
 0x1b2   :  { %1805 = vmatpush.msrb.mxu1 %v2533_v21 }
 0x1b3   :  { %v1087_v58 = vrot.slane %v1060_v57, 2  ;;  %v1088_v62 = vrot.slane %v1060_v57, 4  ;;  %v1089_v38 = vrot.slane %v1060_v57, 6  ;;  %v2406_v7 = vrot.slane %v1060_v57, 9  ;;  %1779 = vmatpush.msrb.mxu0 %v2532_v55 }
 0x1b4   :  { %v1415_v49 = vsel %vm1316_vm13, %v1406_v54, %v1414_v20  ;;  %v1328_v28 = vsel %vm1316_vm13, %v1304_v63, %v1327_v2  ;;  %v1214_v41 = vadd.f32 %v2403_v17, %v1084_v25  ;;  %1806 = vmatpush.msrb.mxu1 %v2531_v56  ;;  %v1212_v20 = vadd.f32 %v2401_v45, %v1083_v59 }
 0x1b5   :  { %v2407_v44 = vrot.slane %v1087_v58, 9  ;;  %v2408_v14 = vrot.slane %v1088_v62, 9  ;;  %v2409_v13 = vrot.slane %v1089_v38, 9  ;;  %v1217_v27 = vadd.f32 %v2406_v7, %v1060_v57  ;;  %1780 = vmatpush.msrb.mxu0 %v2530_v40 }
 0x1b6   :  { %v1416_v33 = vsel %vm1318_vm14, %v1304_v63, %v1415_v49  ;;  %1807 = vmatpush.msrb.mxu1 %v2529_v12  ;;  %v1516_v45 = vsel %vm1316_vm13, %v3589_v31, %v3775_v34  ;;  %v1632_v34 = vsel %vm558_vm8, %v3659_v61, %v1631_v24  ;;  %v1513_v2 = vperm.slane %v1212_v20, 0  ;;  %v2518_v24 = vld [vmem:[%s4378_s4 + $0x2d0] sm:$0xff] }
 0x1b7   :  { %v1219_v16 = vadd.f32 %v2408_v14, %v1088_v62  ;;  %v1218_v1 = vadd.f32 %v2407_v44, %v1087_v58  ;;  %v3801_v8 = vperm.slane %v1217_v27, 0  ;;  %v1220_v10 = vadd.f32 %v2409_v13, %v1089_v38  ;;  %1781 = vmatpush.msrb.mxu0 %v2528_v37  ;;  %v2527_v14 = vld [vmem:[%s4378_s4 + $0x318] sm:$0xff] }
 0x1b8   :  { %v1024_v4 = vpop.f32.mrf.mxu2  ;;  %v1741_v13 = vperm.slane %v1214_v41, 0  ;;  %1808 = vmatpush.msrb.mxu1 %v2527_v14 }
 0x1b9   :  { %v1063_v6 = vadd.f32 %v1062_v30, %v1024_v4  ;;  %v3812_v11 = vperm.slane %v1218_v1, 0  ;;  %v3821_v53 = vperm.slane %v1219_v16, 0  ;;  %v1417_v43 = vsel %vm558_vm8, %v3801_v8, %v1416_v33  ;;  %v1065_v30 = vpop.f32.mrf.mxu3  ;;  %1782 = vmatpush.msrb.mxu0 %v2526_v0  ;;  %v2525_v1 = vld [vmem:[%s4378_s4 + $0x308] sm:$0xff]  ;;  %v2523_v33 = vld [vmem:[%s4378_s4 + $0x2f8] sm:$0xff] }
 0x1ba   :  { %v1329_v18 = vsel %vm1318_vm14, %v3801_v8, %v1328_v28  ;;  %v3852_v26 = vperm.slane %v1220_v10, 0  ;;  %v1627_v16 = vperm.slane %v3850_v60, 0  ;;  %v1633_v4 = vsel %vm1321_vm15, %v3669_v22, %v1632_v34  ;;  %v2522_v28 = vld [vmem:[%s4378_s4 + $0x2f0] sm:$0xff]  ;;  %1809 = vmatpush.msrb.mxu1 %v2525_v1 }
 0x1bb   :  { %v1090_v35 = vrot.slane %v1063_v6, 2  ;;  %v1091_v52 = vrot.slane %v1063_v6, 4  ;;  %v1092_v57 = vrot.slane %v1063_v6, 6  ;;  %v2410_v36 = vrot.slane %v1063_v6, 9  ;;  %1783 = vmatpush.msrb.mxu0 %v2524_v15 }
 0x1bc   :  { %v1418_v5 = vsel %vm1321_vm15, %v3812_v11, %v1417_v43  ;;  %v1330_v54 = vsel %vm558_vm8, %v3812_v11, %v1329_v18  ;;  %v1517_v10 = vsel %vm1318_vm14, %v3600_v48, %v1516_v45  ;;  %v1750_v55 = vsel %vm1314_vm12, %v1741_v13, %v1627_v16  ;;  %v2520_v48 = vld [vmem:[%s4378_s4 + $0x2e0] sm:$0xff]  ;;  %1810 = vmatpush.msrb.mxu1 %v2523_v33  ;;  %v2517_v13 = vld [vmem:[%s4378_s4 + $0x2c8] sm:$0xff] }
 0x1bd   :  { %v2411_v58 = vrot.slane %v1090_v35, 9  ;;  %v2412_v62 = vrot.slane %v1091_v52, 9  ;;  %v2413_v38 = vrot.slane %v1092_v57, 9  ;;  %v1221_v7 = vadd.f32 %v2410_v36, %v1063_v6  ;;  %1784 = vmatpush.msrb.mxu0 %v2522_v28 }
 0x1be   :  { %v1419_v25 = vsel %vm1323_vm0, %v3821_v53, %v1418_v5  ;;  %v1331_v63 = vsel %vm1321_vm15, %v3821_v53, %v1330_v54  ;;  %v2521_v54 = vld [vmem:[%s4378_s4 + $0x2e8] sm:$0xff]  ;;  %v1636_v12 = vsel %vm1314_vm12, %v1627_v16, %v1513_v2  ;;  %v1518_v20 = vsel %vm558_vm8, %v3619_v19, %v1517_v10 }
 0x1bf   :  { %v1222_v42 = vadd.f32 %v2411_v58, %v1090_v35  ;;  %v1223_v29 = vadd.f32 %v2412_v62, %v1091_v52  ;;  %v3860_v44 = vperm.slane %v1221_v7, 0  ;;  %v1224_v27 = vadd.f32 %v2413_v38, %v1092_v57  ;;  %1785 = vmatpush.msrb.mxu0 %v2520_v48  ;;  %1811 = vmatpush.msrb.mxu1 %v2521_v54  ;;  %v1859_v48 = vld [vmem:[%s4379_s6 + $0x58] sm:$0xff]  ;;  %v1856_v54 = vld [vmem:[%s4379_s6 + $0x40] sm:$0xff] }
 0x1c0   :  { %v1420_v51 = vsel %vm1325_vm1, %v3852_v26, %v1419_v25  ;;  %v1027_v59 = vpop.f32.mrf.mxu2  ;;  %v1332_v39 = vsel %vm1323_vm0, %v3852_v26, %v1331_v63  ;;  %v1748_v35 = vsel %vm1323_vm0, %v3756_v23, %v3835_v9  ;;  %v1751_v52 = vsel %vm1316_vm13, %v3821_v53, %v1750_v55  ;;  %v2519_v25 = vld [vmem:[%s4378_s4 + $0x2d8] sm:$0xff]  ;;  %v2516_v63 = vld [vmem:[%s4378_s4 + $0x2c0] sm:$0xff] }
 0x1c1   :  { %v3873_v49 = vperm.slane %v1222_v42, 0  ;;  %v3875_v46 = vperm.slane %v1223_v29, 0  ;;  %2450 = vmatmul.msk.f32.gmra.mxu2 %vm1337_vm2, %v1420_v51  ;;  %2454 = vmatmul.msk.f32.gmra.mxu3 %vm1337_vm2, %v1420_v51  ;;  %v3879_v47 = vadd.f32 %v1065_v30, %v1027_v59  ;;  %v1333_v31 = vsel %vm1325_vm1, %v3860_v44, %v1332_v39 }
 0x1c2   :  { %2442 = vmatmul.msk.f32.gmra.mxu0 %vm1337_vm2, %v1333_v31  ;;  %2446 = vmatmul.msk.f32.gmra.mxu1 %vm1337_vm2, %v1333_v31  ;;  %v3905_v50 = vperm.slane %v1224_v27, 0  ;;  %v3941_v9 = vsel %vm1325_vm1, %v1513_v2, %v1748_v35  ;;  %v1752_v58 = vsel %vm1318_vm14, %v3852_v26, %v1751_v52  ;;  %v1637_v42 = vsel %vm1316_vm13, %v3812_v11, %v1636_v12 }
 0x1c3   :  { %v1421_v3 = vsel %vm1314_vm12, %v3873_v49, %v3860_v44  ;;  %v2414_v17 = vrot.slane %v3879_v47, 9  ;;  %v1334_v43 = vsel %vm1314_vm12, %v3875_v46, %v3873_v49  ;;  %v1093_v18 = vrot.slane %v3879_v47, 2  ;;  %1786 = vmatpush.msrb.mxu0 %v2518_v24  ;;  %1812 = vmatpush.msrb.mxu1 %v2519_v25  ;;  %v1855_v24 = vld [vmem:[%s4379_s6 + $0x38] sm:$0xff]  ;;  %v1864_v25 = vld [vmem:[%s4379_s6 + $0x80] sm:$0xff] }
 0x1c4   :  { %v1422_v6 = vsel %vm1316_vm13, %v3875_v46, %v1421_v3  ;;  %v1094_v40 = vrot.slane %v3879_v47, 4  ;;  %v1095_v57 = vrot.slane %v3879_v47, 6  ;;  %v1335_v37 = vsel %vm1316_vm13, %v3905_v50, %v1334_v43  ;;  %v1861_v43 = vld [vmem:[%s4379_s6 + $0x68] sm:$0xff] }
 0x1c5   :  { %v1225_v21 = vadd.f32 %v2414_v17, %v3879_v47  ;;  %v1423_v56 = vsel %vm1318_vm14, %v3905_v50, %v1422_v6  ;;  %v2415_v41 = vrot.slane %v1093_v18, 9  ;;  %v1753_v29 = vsel %vm558_vm8, %v3860_v44, %v1752_v58  ;;  %1787 = vmatpush.msrb.mxu0 %v2516_v63  ;;  %1813 = vmatpush.msrb.mxu1 %v2517_v13  ;;  %v1849_v13 = vld [vmem:[%s4379_s6 + $0x8] sm:$0xff] }
 0x1c6   :  { %v2416_v5 = vrot.slane %v1094_v40, 9  ;;  %v2417_v62 = vrot.slane %v1095_v57, 9  ;;  %v1754_v19 = vsel %vm1321_vm15, %v3873_v49, %v1753_v29  ;;  %v1522_v30 = vsel %vm1314_vm12, %v1513_v2, %v3756_v23  ;;  %v1850_v29 = vld [vmem:[%s4379_s6 + $0x10] sm:$0xff] }
 0x1c7   :  { %v3932_v36 = vperm.slane %v1225_v21, 0  ;;  %v1226_v7 = vadd.f32 %v2415_v41, %v1093_v18  ;;  %v1755_v51 = vsel %vm1323_vm0, %v3875_v46, %v1754_v19  ;;  %v1634_v59 = vsel %vm1323_vm0, %v3733_v32, %v1633_v4  ;;  %v1860_v18 = vld [vmem:[%s4379_s6 + $0x60] sm:$0xff] }
 0x1c8   :  { %v1227_v60 = vadd.f32 %v2416_v5, %v1094_v40  ;;  %v1228_v27 = vadd.f32 %v2417_v62, %v1095_v57  ;;  %v1523_v45 = vsel %vm1316_vm13, %v3801_v8, %v1522_v30  ;;  %v1756_v47 = vsel %vm1325_vm1, %v3905_v50, %v1755_v51  ;;  %v1867_v40 = vld [vmem:[%s4379_s6 + $0x98] sm:$0xff]  ;;  %v1857_v57 = vld [vmem:[%s4379_s6 + $0x48] sm:$0xff]  ;;  %v1866_v5 = vld [vmem:[%s4379_s6 + $0x90] sm:$0xff] }
 0x1c9   :  { %2451 = vmatmul.msk.f32.gmra.mxu2 %vm1337_vm2, %v1423_v56  ;;  %2455 = vmatmul.msk.f32.gmra.mxu3 %vm1337_vm2, %v1423_v56  ;;  %v1336_v38 = vsel %vm1318_vm14, %v3932_v36, %v1335_v37  ;;  %v1514_v0 = vperm.slane %v1226_v7, 0  ;;  %v1519_v39 = vsel %vm1321_vm15, %v3659_v61, %v1518_v20  ;;  %v1638_v15 = vsel %vm1318_vm14, %v3821_v53, %v1637_v42  ;;  %v1858_v56 = vld [vmem:[%s4379_s6 + $0x50] sm:$0xff]  ;;  %v1853_v7 = vld [vmem:[%s4379_s6 + $0x28] sm:$0xff]  ;;  %v1851_v42 = vld [vmem:[%s4379_s6 + $0x18] sm:$0xff] }
 0x1ca   :  { %2443 = vmatmul.msk.f32.gmra.mxu0 %vm1337_vm2, %v1336_v38  ;;  %2447 = vmatmul.msk.f32.gmra.mxu1 %vm1337_vm2, %v1336_v38  ;;  %v1628_v14 = vperm.slane %v1227_v60, 0  ;;  %v1742_v16 = vperm.slane %v1228_v27, 0  ;;  %v1520_v34 = vsel %vm1323_vm0, %v3669_v22, %v1519_v39  ;;  %v1635_v8 = vsel %vm1325_vm1, %v3756_v23, %v1634_v59  ;;  %v1865_v38 = vld [vmem:[%s4379_s6 + $0x88] sm:$0xff]  ;;  %v1852_v60 = vld [vmem:[%s4379_s6 + $0x20] sm:$0xff] }
 0x1cb   :  { %v1757_v31 = vsel %vm1314_vm12, %v1514_v0, %v3932_v36  ;;  %v1524_v2 = vsel %vm1318_vm14, %v3812_v11, %v1523_v45  ;;  %v1639_v3 = vsel %vm558_vm8, %v3852_v26, %v1638_v15  ;;  %v1521_v22 = vsel %vm1325_vm1, %v3733_v32, %v1520_v34  ;;  %1915 = vmatpush.msrb.mxu3 %v1867_v40  ;;  %v1848_v19 = vld [vmem:[%s4379_s6] sm:$0xff] }
 0x1cc   :  { %v1758_v1 = vsel %vm1316_vm13, %v1628_v14, %v1757_v31  ;;  %v1640_v17 = vsel %vm1321_vm15, %v3860_v44, %v1639_v3  ;;  %v1525_v23 = vsel %vm558_vm8, %v3821_v53, %v1524_v2  ;;  %v1643_v53 = vsel %vm1314_vm12, %v3932_v36, %v3905_v50  ;;  %v1830_v34 = vld [vmem:[%s4380_s5] sm:$0x3] }
 0x1cd   :  { %v1759_v61 = vsel %vm1318_vm14, %v1742_v16, %v1758_v1  ;;  %v1641_v11 = vsel %vm1323_vm0, %v3873_v49, %v1640_v17  ;;  %v1526_v4 = vsel %vm1321_vm15, %v3852_v26, %v1525_v23  ;;  %v1644_v26 = vsel %vm1316_vm13, %v1514_v0, %v1643_v53  ;;  %1916 = vmatpush.msrb.mxu3 %v1866_v5  ;;  %v2568_v1 = vld [vmem:[%s4381_s7 + $0x98] sm:$0xff]  ;;  %v2566_v17 = vld [vmem:[%s4381_s7 + $0x88] sm:$0xff]  ;;  %v2565_v53 = vld [vmem:[%s4381_s7 + $0x80] sm:$0xff] }
 0x1ce   :  { %v1527_v28 = vsel %vm1323_vm0, %v3860_v44, %v1526_v4  ;;  %v1642_v32 = vsel %vm1325_vm1, %v3875_v46, %v1641_v11  ;;  %v1529_v44 = vsel %vm1314_vm12, %v3905_v50, %v3875_v46  ;;  %v1645_v33 = vsel %vm1318_vm14, %v1628_v14, %v1644_v26  ;;  %v1863_v46 = vld [vmem:[%s4379_s6 + $0x78] sm:$0xff]  ;;  %v1862_v50 = vld [vmem:[%s4379_s6 + $0x70] sm:$0xff] }
 0x1cf   :  { %v1528_v6 = vsel %vm1325_vm1, %v3873_v49, %v1527_v28  ;;  %v1530_v10 = vsel %vm1316_vm13, %v3932_v36, %v1529_v44  ;;  %1877 = vmatpush.msra.mxu2 %v1863_v46  ;;  %1917 = vmatpush.msrb.mxu3 %v1865_v38  ;;  %v1832_v3 = vperm.slane %v1830_v34, 0 }
 0x1d0   :  { %v1531_v49 = vsel %vm1318_vm14, %v1514_v0, %v1530_v10 }
 0x1d1   :  { %2509 = vmatmul.msk.f32.vlgmr.msrb.gmra.mxu2 %vm1337_vm2, %v1635_v8  ;;  %2513 = vmatmul.msk.f32.vlgmr.msra.gmra.mxu3 %vm1337_vm2, %v1635_v8  ;;  %v2567_v8 = vld [vmem:[%s4381_s7 + $0x90] sm:$0xff] }
 0x1d2   :  { %2479 = vmatmul.msk.f32.vlgmr.msra.gmra.mxu0 %vm1337_vm2, %v1521_v22  ;;  %2483 = vmatmul.msk.f32.vlgmr.msra.gmra.mxu1 %vm1337_vm2, %v1521_v22  ;;  %v1833_v22 = vperm.slane %v1830_v34, 1  ;;  %v1992_v34 = vld [vmem:[%s4381_s7 + $0x30] sm:$0xff] }
 0x1d3   :  { %1878 = vmatpush.msra.mxu2 %v1862_v50  ;;  %1918 = vmatpush.msrb.mxu3 %v1864_v25  ;;  %v2564_v50 = vld [vmem:[%s4381_s7 + $0x78] sm:$0xff] }
 0x1d4   :  { %2021 = vmatpush.msra.mxu0 %v2568_v1  ;;  %v2559_v1 = vld [vmem:[%s4381_s7 + $0x50] sm:$0xff] }
 0x1d5   :  { %1879 = vmatpush.msra.mxu2 %v1861_v43 }
 0x1d6   :  { %2022 = vmatpush.msra.mxu0 %v2567_v8  ;;  %v1991_v8 = vld [vmem:[%s4381_s7 + $0x28] sm:$0xff] }
 0x1d7   :  { %1880 = vmatpush.msra.mxu2 %v1860_v18 }
 0x1d8   :  { %2023 = vmatpush.msra.mxu0 %v2566_v17  ;;  %v2575_v17 = vld [vmem:[%s4381_s7 + $0xc0] sm:$0xff] }
 0x1d9   :  { %2510 = vmatmul.msk.f32.gmra.mxu2 %vm1337_vm2, %v1642_v32  ;;  %2514 = vmatmul.msk.f32.gmra.mxu3 %vm1337_vm2, %v1642_v32 }
 0x1da   :  { %2480 = vmatmul.msk.f32.gmra.mxu0 %vm1337_vm2, %v1528_v6  ;;  %2484 = vmatmul.msk.f32.gmra.mxu1 %vm1337_vm2, %v1528_v6 }
 0x1db   :  { %1881 = vmatpush.msra.mxu2 %v1859_v48  ;;  %2024 = vmatpush.msra.mxu0 %v2565_v53  ;;  %v2573_v53 = vld [vmem:[%s4381_s7 + $0xb0] sm:$0xff] }
 0x1dd   :  { %1882 = vmatpush.msra.mxu2 %v1858_v56  ;;  %2025 = vmatpush.msra.mxu0 %v2564_v50  ;;  %v1986_v50 = vld [vmem:[%s4381_s7] sm:$0xff] }
 0x1df   :  { %1883 = vmatpush.msra.mxu2 %v1857_v57 }
 0x1e1   :  { %2511 = vmatmul.msk.f32.gmra.mxu2 %vm1337_vm2, %v1645_v33  ;;  %2515 = vmatmul.msk.f32.gmra.mxu3 %vm1337_vm2, %v1645_v33 }
 0x1e2   :  { %2481 = vmatmul.msk.f32.gmra.mxu0 %vm1337_vm2, %v1531_v49  ;;  %2485 = vmatmul.msk.f32.gmra.mxu1 %vm1337_vm2, %v1531_v49 }
 0x1e3   :  { %1884 = vmatpush.msra.mxu2 %v1856_v54 }
 0x1e5   :  { %1885 = vmatpush.msra.mxu2 %v1855_v24 }
 0x1ea   :  { %2539 = vmatmul.msk.f32.vlgmr.msrb.gmra.mxu0 %vm1337_vm2, %v3941_v9  ;;  %2543 = vmatmul.msk.f32.vlgmr.msrb.gmra.mxu1 %vm1337_vm2, %v3941_v9  ;;  %v1854_v9 = vld [vmem:[%s4379_s6 + $0x30] sm:$0xff] }
 0x1eb   :  { %1886 = vmatpush.msra.mxu2 %v1854_v9 }
 0x1ed   :  { %1887 = vmatpush.msra.mxu2 %v1853_v7 }
 0x1ef   :  { %1888 = vmatpush.msra.mxu2 %v1852_v60 }
 0x1f1   :  { %1889 = vmatpush.msra.mxu2 %v1851_v42 }
 0x1f2   :  { %2540 = vmatmul.msk.f32.gmra.mxu0 %vm1337_vm2, %v1756_v47  ;;  %2544 = vmatmul.msk.f32.gmra.mxu1 %vm1337_vm2, %v1756_v47 }
 0x1f3   :  { %1890 = vmatpush.msra.mxu2 %v1850_v29 }
 0x1f5   :  { %1891 = vmatpush.msra.mxu2 %v1849_v13  ;;  %v1995_v13 = vld [vmem:[%s4381_s7 + $0x48] sm:$0xff] }
 0x1f6   :  { %2048 = vmatpush.msra.mxu1 %v1995_v13 }
 0x1f7   :  { %1892 = vmatpush.msra.mxu2 %v1848_v19  ;;  %v2562_v19 = vld [vmem:[%s4381_s7 + $0x68] sm:$0xff] }
 0x1fa   :  { %2541 = vmatmul.msk.f32.gmra.mxu0 %vm1337_vm2, %v1759_v61  ;;  %2545 = vmatmul.msk.f32.gmra.mxu1 %vm1337_vm2, %v1759_v61 }
 0x227   :  { %v1368_v55 = vpop.f32.mrf.mxu0  ;;  %v1394_v21 = vpop.f32.mrf.mxu1 }
 0x229   :  { %v1453_v36 = vpop.f32.mrf.mxu2  ;;  %v1479_v41 = vpop.f32.mrf.mxu3 }
 0x22a   :  { %v1454_v39 = vadd.f32 %v1453_v36, %v1368_v55  ;;  %v1480_v15 = vadd.f32 %v1479_v41, %v1394_v21 }
 0x23f   :  { %v4065_v35 = vpop.f32.mrf.mxu0  ;;  %v4067_v52 = vpop.f32.mrf.mxu1 }
 0x244   :  { %v1456_v58 = vpop.f32.mrf.mxu2  ;;  %v1482_v62 = vpop.f32.mrf.mxu3 }
 0x245   :  { %v1457_v4 = vadd.f32 %v1456_v58, %v4065_v35  ;;  %v1483_v28 = vadd.f32 %v1482_v62, %v4067_v52 }
 0x247   :  { %v4084_v37 = vpop.f32.mrf.mxu0  ;;  %v4086_v12 = vpop.f32.mrf.mxu1 }
 0x24c   :  { %v1459_v0 = vpop.f32.mrf.mxu2  ;;  %v1485_v14 = vpop.f32.mrf.mxu3 }
 0x24d   :  { %v1460_v40 = vadd.f32 %v1459_v0, %v4084_v37  ;;  %v1486_v48 = vadd.f32 %v1485_v14, %v4086_v12  ;;  %v2563_v0 = vld [vmem:[%s4381_s7 + $0x70] sm:$0xff]  ;;  %v2580_v14 = vld [vmem:[%s4381_s7 + $0xe8] sm:$0xff] }
 0x24e   :  { %2026 = vmatpush.msra.mxu0 %v2563_v0  ;;  %2086 = vmatpush.msra.mxu3 %v2580_v14 }
 0x24f   :  { %v1561_v63 = vpop.f32.mrf.mxu0  ;;  %v1587_v20 = vpop.f32.mrf.mxu1 }
 0x250   :  { %v1596_v16 = vadd.f32 %v1561_v63, %v1454_v39  ;;  %v1597_v31 = vadd.f32 %v1587_v20, %v1480_v15  ;;  %2027 = vmatpush.msra.mxu0 %v2562_v19  ;;  %v2590_v39 = vld [vmem:[%s4381_s7 + $0x130] sm:$0xff]  ;;  %v2560_v15 = vld [vmem:[%s4381_s7 + $0x58] sm:$0xff] }
 0x254   :  { %v1675_v51 = vpop.f32.mrf.mxu2  ;;  %v1701_v59 = vpop.f32.mrf.mxu3 }
 0x255   :  { %v1710_v2 = vadd.f32 %v1675_v51, %v1596_v16  ;;  %v1711_v61 = vadd.f32 %v1701_v59, %v1597_v31  ;;  %v2579_v51 = vld [vmem:[%s4381_s7 + $0xe0] sm:$0xff]  ;;  %v2577_v16 = vld [vmem:[%s4381_s7 + $0xd0] sm:$0xff]  ;;  %v2589_v31 = vld [vmem:[%s4381_s7 + $0x128] sm:$0xff] }
 0x256   :  { %v2561_v59 = vld [vmem:[%s4381_s7 + $0x60] sm:$0xff]  ;;  %2087 = vmatpush.msra.mxu3 %v2579_v51 }
 0x257   :  { %v1564_v27 = vpop.f32.mrf.mxu0  ;;  %v1590_v30 = vpop.f32.mrf.mxu1  ;;  %2028 = vmatpush.msra.mxu0 %v2561_v59 }
 0x258   :  { %v1598_v10 = vadd.f32 %v1564_v27, %v1457_v4  ;;  %v1599_v33 = vadd.f32 %v1590_v30, %v1483_v28  ;;  %v2591_v27 = vld [vmem:[%s4381_s7 + $0x138] sm:$0xff]  ;;  %v1994_v30 = vld [vmem:[%s4381_s7 + $0x40] sm:$0xff] }
 0x259   :  { %2125 = vmatpush.msrb.mxu2 %v2591_v27  ;;  %2049 = vmatpush.msra.mxu1 %v1994_v30  ;;  %v1989_v4 = vld [vmem:[%s4381_s7 + $0x18] sm:$0xff] }
 0x25a   :  { %2029 = vmatpush.msra.mxu0 %v2560_v15  ;;  %v2574_v28 = vld [vmem:[%s4381_s7 + $0xb8] sm:$0xff] }
 0x25b   :  { %2126 = vmatpush.msrb.mxu2 %v2590_v39 }
 0x25c   :  { %v1678_v26 = vpop.f32.mrf.mxu2  ;;  %v1704_v44 = vpop.f32.mrf.mxu3  ;;  %2030 = vmatpush.msra.mxu0 %v2559_v1 }
 0x25d   :  { %v1712_v55 = vadd.f32 %v1678_v26, %v1598_v10  ;;  %v1713_v21 = vadd.f32 %v1704_v44, %v1599_v33  ;;  %2127 = vmatpush.msrb.mxu2 %v2589_v31  ;;  %v1988_v26 = vld [vmem:[%s4381_s7 + $0x10] sm:$0xff]  ;;  %v1987_v10 = vld [vmem:[%s4381_s7 + $0x8] sm:$0xff] }
 0x25e   :  { %v2599_v44 = vld [vmem:[%s4381_s7 + $0x170] sm:$0xff]  ;;  %v2572_v33 = vld [vmem:[%s4381_s7 + $0xa8] sm:$0xff] }
 0x25f   :  { %v1567_v45 = vpop.f32.mrf.mxu0  ;;  %v1593_v47 = vpop.f32.mrf.mxu1 }
 0x260   :  { %v1600_v57 = vadd.f32 %v1567_v45, %v1460_v40  ;;  %v1601_v36 = vadd.f32 %v1593_v47, %v1486_v48  ;;  %v1993_v45 = vld [vmem:[%s4381_s7 + $0x38] sm:$0xff]  ;;  %v2199_v48 = vld [vmem:[%s4382_s9 + $0x70] sm:$0xff] }
 0x261   :  { %v2578_v47 = vld [vmem:[%s4381_s7 + $0xd8] sm:$0xff]  ;;  %2050 = vmatpush.msra.mxu1 %v1993_v45 }
 0x262   :  { %2088 = vmatpush.msra.mxu3 %v2578_v47  ;;  %v2583_v40 = vld [vmem:[%s4381_s7 + $0xf8] sm:$0xff] }
 0x263   :  { %2051 = vmatpush.msra.mxu1 %v1992_v34 }
 0x264   :  { %v1681_v24 = vpop.f32.mrf.mxu2  ;;  %v1707_v9 = vpop.f32.mrf.mxu3  ;;  %2089 = vmatpush.msra.mxu3 %v2577_v16 }
 0x265   :  { %v1714_v58 = vadd.f32 %v1681_v24, %v1600_v57  ;;  %v1715_v62 = vadd.f32 %v1707_v9, %v1601_v36  ;;  %2052 = vmatpush.msra.mxu1 %v1991_v8 }
 0x267   :  { %v1789_v23 = vpop.f32.mrf.mxu0  ;;  %v1815_v11 = vpop.f32.mrf.mxu1 }
 0x268   :  { %v1824_v32 = vadd.f32 %v1789_v23, %v1710_v2  ;;  %v1825_v6 = vadd.f32 %v1815_v11, %v1711_v61  ;;  %v2576_v2 = vld [vmem:[%s4381_s7 + $0xc8] sm:$0xff]  ;;  %v2601_v23 = vld [vmem:[%s4381_s7 + $0x180] sm:$0xff]  ;;  %v2587_v11 = vld [vmem:[%s4381_s7 + $0x118] sm:$0xff] }
 0x269   :  { %2090 = vmatpush.msra.mxu3 %v2576_v2  ;;  %v2602_v61 = vld [vmem:[%s4381_s7 + $0x188] sm:$0xff] }
 0x26a   :  { %v1836_v49 = vadd.f32 %v1832_v3, %v1824_v32  ;;  %v1837_v46 = vadd.f32 %v1833_v22, %v1825_v6  ;;  %2164 = vmatpush.msrb.mxu0 %v2602_v61  ;;  %v2600_v32 = vld [vmem:[%s4381_s7 + $0x178] sm:$0xff]  ;;  %v2586_v6 = vld [vmem:[%s4381_s7 + $0x110] sm:$0xff] }
 0x26b   :  { %2091 = vmatpush.msra.mxu3 %v2575_v17 }
 0x26c   :  { %2642 = vtanh.f32 %v1836_v49  ;;  %2165 = vmatpush.msrb.mxu0 %v2601_v23  ;;  %v2585_v49 = vld [vmem:[%s4381_s7 + $0x108] sm:$0xff] }
 0x26d   :  { %2644 = vtanh.f32 %v1837_v46  ;;  %2092 = vmatpush.msra.mxu3 %v2574_v28  ;;  %v2598_v46 = vld [vmem:[%s4381_s7 + $0x168] sm:$0xff] }
 0x26e   :  { %2166 = vmatpush.msrb.mxu0 %v2600_v32 }
 0x26f   :  { %v1792_v43 = vpop.f32.mrf.mxu0  ;;  %v1818_v18 = vpop.f32.mrf.mxu1  ;;  %2093 = vmatpush.msra.mxu3 %v2573_v53 }
 0x270   :  { %v1826_v56 = vadd.f32 %v1792_v43, %v1712_v55  ;;  %v1827_v35 = vadd.f32 %v1818_v18, %v1713_v21  ;;  %2167 = vmatpush.msrb.mxu0 %v2599_v44  ;;  %v2571_v55 = vld [vmem:[%s4381_s7 + $0xa0] sm:$0xff]  ;;  %v2596_v18 = vld [vmem:[%s4381_s7 + $0x158] sm:$0xff] }
 0x271   :  { %2094 = vmatpush.msra.mxu3 %v2572_v33  ;;  %v2584_v21 = vld [vmem:[%s4381_s7 + $0x100] sm:$0xff] }
 0x272   :  { %v2643_v52 = vpop.eup %2642  ;;  %v1838_v41 = vadd.f32 %v1832_v3, %v1826_v56  ;;  %v1839_v5 = vadd.f32 %v1833_v22, %v1827_v35  ;;  %2168 = vmatpush.msrb.mxu0 %v2598_v46  ;;  %v2597_v43 = vld [vmem:[%s4381_s7 + $0x160] sm:$0xff]  ;;  %v2595_v56 = vld [vmem:[%s4381_s7 + $0x150] sm:$0xff] }
 0x273   :  { %v2645_v54 = vpop.eup %2644  ;;  %1893 = vmatmul.f32.vlgmr.msra.gmra.mxu2 %v2643_v52  ;;  %2095 = vmatpush.msra.mxu3 %v2571_v55  ;;  %v2582_v35 = vld [vmem:[%s4381_s7 + $0xf0] sm:$0xff]  ;;  %v2198_v52 = vld [vmem:[%s4382_s9 + $0x68] sm:$0xff]  ;;  %v2197_v46 = vld [vmem:[%s4382_s9 + $0x60] sm:$0xff] }
 0x274   :  { %2646 = vtanh.f32 %v1838_v41  ;;  %2546 = vmatmul.msk.f32.vlgmr.msrb.gmra.mxu3 %vm160_vm3, %v2645_v54  ;;  %2169 = vmatpush.msrb.mxu0 %v2597_v43  ;;  %v2594_v41 = vld [vmem:[%s4381_s7 + $0x148] sm:$0xff]  ;;  %v2593_v54 = vld [vmem:[%s4381_s7 + $0x140] sm:$0xff]  ;;  %v2195_v55 = vld [vmem:[%s4382_s9 + $0x50] sm:$0xff] }
 0x275   :  { %2648 = vtanh.f32 %v1839_v5  ;;  %v2193_v43 = vld [vmem:[%s4382_s9 + $0x40] sm:$0xff] }
 0x276   :  { %2170 = vmatpush.msrb.mxu0 %v2596_v18  ;;  %v2192_v18 = vld [vmem:[%s4382_s9 + $0x38] sm:$0xff] }
 0x277   :  { %v1795_v37 = vpop.f32.mrf.mxu0  ;;  %v1821_v38 = vpop.f32.mrf.mxu1 }
 0x278   :  { %v1828_v12 = vadd.f32 %v1795_v37, %v1714_v58  ;;  %v1829_v7 = vadd.f32 %v1821_v38, %v1715_v62  ;;  %2171 = vmatpush.msrb.mxu0 %v2595_v56  ;;  %v2189_v56 = vld [vmem:[%s4382_s9 + $0x20] sm:$0xff] }
 0x27a   :  { %v2647_v60 = vpop.eup %2646  ;;  %v1840_v25 = vadd.f32 %v1832_v3, %v1828_v12  ;;  %v1841_v63 = vadd.f32 %v1833_v22, %v1829_v7  ;;  %v2588_v3 = vld [vmem:[%s4381_s7 + $0x120] sm:$0xff]  ;;  %2172 = vmatpush.msrb.mxu0 %v2594_v41  ;;  %v2186_v41 = vld [vmem:[%s4382_s9 + $0x8] sm:$0xff] }
 0x27b   :  { %v2649_v20 = vpop.eup %2648  ;;  %1896 = vmatmul.f32.gmra.mxu2 %v2647_v60  ;;  %v1990_v22 = vld [vmem:[%s4381_s7 + $0x20] sm:$0xff] }
 0x27c   :  { %2650 = vtanh.f32 %v1840_v25  ;;  %2547 = vmatmul.msk.f32.gmra.mxu3 %vm160_vm3, %v2649_v20  ;;  %2128 = vmatpush.msrb.mxu2 %v2588_v3 }
 0x27d   :  { %2652 = vtanh.f32 %v1841_v63  ;;  %2053 = vmatpush.msra.mxu1 %v1990_v22  ;;  %2173 = vmatpush.msrb.mxu0 %v2593_v54  ;;  %v2185_v54 = vld [vmem:[%s4382_s9] sm:$0xff] }
 0x27e   :  { %2129 = vmatpush.msrb.mxu2 %v2587_v11 }
 0x27f   :  { %2054 = vmatpush.msra.mxu1 %v1989_v4 }
 0x280   :  { %2130 = vmatpush.msrb.mxu2 %v2586_v6 }
 0x281   :  { %2055 = vmatpush.msra.mxu1 %v1988_v26 }
 0x282   :  { %v2651_v42 = vpop.eup %2650  ;;  %2131 = vmatpush.msrb.mxu2 %v2585_v49 }
 0x283   :  { %v2653_v29 = vpop.eup %2652  ;;  %1899 = vmatmul.f32.gmra.mxu2 %v2651_v42  ;;  %2056 = vmatpush.msra.mxu1 %v1987_v10 }
 0x284   :  { %2548 = vmatmul.msk.f32.gmra.mxu3 %vm160_vm3, %v2653_v29  ;;  %2132 = vmatpush.msrb.mxu2 %v2584_v21  ;;  %vm2012_vm3 = vcmask 654336   ;;  %v2194_v21 = vld [vmem:[%s4382_s9 + $0x48] sm:$0xff] }
 0x285   :  { %2057 = vmatpush.msra.mxu1 %v1986_v50  ;;  %v2196_v50 = vld [vmem:[%s4382_s9 + $0x58] sm:$0xff] }
 0x286   :  { %2133 = vmatpush.msrb.mxu2 %v2583_v40  ;;  %v2191_v40 = vld [vmem:[%s4382_s9 + $0x30] sm:$0xff] }
 0x287   :  { %2209 = vmatpush.msrb.mxu1 %v2199_v48  ;;  %v2190_v48 = vld [vmem:[%s4382_s9 + $0x28] sm:$0xff] }
 0x288   :  { %2134 = vmatpush.msrb.mxu2 %v2582_v35  ;;  %v2188_v35 = vld [vmem:[%s4382_s9 + $0x18] sm:$0xff] }
 0x289   :  { %2210 = vmatpush.msrb.mxu1 %v2198_v52  ;;  %v2187_v52 = vld [vmem:[%s4382_s9 + $0x10] sm:$0xff] }
 0x28b   :  { %2211 = vmatpush.msrb.mxu1 %v2197_v46 }
 0x28d   :  { %2212 = vmatpush.msrb.mxu1 %v2196_v50 }
 0x28f   :  { %2213 = vmatpush.msrb.mxu1 %v2195_v55 }
 0x291   :  { %2214 = vmatpush.msrb.mxu1 %v2194_v21 }
 0x293   :  { %2215 = vmatpush.msrb.mxu1 %v2193_v43 }
 0x295   :  { %2216 = vmatpush.msrb.mxu1 %v2192_v18 }
 0x297   :  { %2217 = vmatpush.msrb.mxu1 %v2191_v40 }
 0x299   :  { %2218 = vmatpush.msrb.mxu1 %v2190_v48 }
 0x29b   :  { %2219 = vmatpush.msrb.mxu1 %v2189_v56 }
 0x29d   :  { %2220 = vmatpush.msrb.mxu1 %v2188_v35 }
 0x29f   :  { %2221 = vmatpush.msrb.mxu1 %v2187_v52 }
 0x2a1   :  { %2222 = vmatpush.msrb.mxu1 %v2186_v41 }
 0x2a3   :  { %2223 = vmatpush.msrb.mxu1 %v2185_v54 }
 0x2f6   :  { %v1894_v57 = vpop.f32.mrf.mxu2 }
 0x2f7   :  { %v1920_v36 = vpop.f32.mrf.mxu3 }
 0x2f8   :  { %v1921_v5 = vadd.f32 %v1920_v36, %v1894_v57  ;;  %v2239_v57 = vld [vmem:[%s4385_s11 + $0x50] sm:$0xf]  ;;  %v2238_v36 = vld [vmem:[%s4385_s11 + $0x48] sm:$0xff] }
 0x2f9   :  { %2605 = vmatpush.msk.msrb.mxu3 %vm1344_vm11, %v2239_v57 }
 0x2fa   :  { %v1932_v24 = vrot.slane %v1921_v5, 2  ;;  %v1933_v9 = vrot.slane %v1921_v5, 4  ;;  %v2549_v62 = vrot.slane %v1921_v5, 9  ;;  %v1934_v7 = vrot.slane %v1921_v5, 6 }
 0x2fb   :  { %2256 = vmatpush.msrb.mxu3 %v2238_v36 }
 0x2fc   :  { %v2550_v37 = vrot.slane %v1932_v24, 9  ;;  %v2551_v60 = vrot.slane %v1933_v9, 9  ;;  %v1976_v42 = vadd.f32 %v2549_v62, %v1921_v5  ;;  %v2552_v19 = vrot.slane %v1934_v7, 9  ;;  %v2237_v5 = vld [vmem:[%s4385_s11 + $0x40] sm:$0xff] }
 0x2fd   :  { %2257 = vmatpush.msrb.mxu3 %v2237_v5 }
 0x2fe   :  { %v1897_v58 = vpop.f32.mrf.mxu2  ;;  %v1977_v29 = vadd.f32 %v2550_v37, %v1932_v24  ;;  %v1978_v27 = vadd.f32 %v2551_v60, %v1933_v9  ;;  %v2037_v16 = vperm.slane %v1976_v42, 0  ;;  %v1979_v61 = vadd.f32 %v2552_v19, %v1934_v7  ;;  %v2236_v24 = vld [vmem:[%s4385_s11 + $0x38] sm:$0xff]  ;;  %v2235_v9 = vld [vmem:[%s4385_s11 + $0x30] sm:$0xff] }
 0x2ff   :  { %v1923_v38 = vpop.f32.mrf.mxu3  ;;  %2258 = vmatpush.msrb.mxu3 %v2236_v24  ;;  %v2231_v19 = vld [vmem:[%s4385_s11 + $0x10] sm:$0xff] }
 0x300   :  { %v1924_v12 = vadd.f32 %v1923_v38, %v1897_v58  ;;  %v2009_v15 = vperm.slane %v1977_v29, 0  ;;  %v2075_v2 = vperm.slane %v1978_v27, 0  ;;  %v2114_v26 = vperm.slane %v1979_v61, 0  ;;  %v2234_v58 = vld [vmem:[%s4385_s11 + $0x28] sm:$0xff] }
 0x301   :  { %2259 = vmatpush.msrb.mxu3 %v2235_v9  ;;  %v2230_v27 = vld [vmem:[%s4385_s11 + $0x8] sm:$0xff] }
 0x302   :  { %v1935_v25 = vrot.slane %v1924_v12, 2  ;;  %v1936_v63 = vrot.slane %v1924_v12, 4  ;;  %v1937_v20 = vrot.slane %v1924_v12, 6  ;;  %v2553_v47 = vrot.slane %v1924_v12, 9 }
 0x303   :  { %2260 = vmatpush.msrb.mxu3 %v2234_v58 }
 0x304   :  { %v2554_v0 = vrot.slane %v1935_v25, 9  ;;  %v2555_v14 = vrot.slane %v1936_v63, 9  ;;  %v2556_v13 = vrot.slane %v1937_v20, 9  ;;  %v1980_v4 = vadd.f32 %v2553_v47, %v1924_v12 }
 0x306   :  { %v1900_v30 = vpop.f32.mrf.mxu2  ;;  %v1982_v51 = vadd.f32 %v2555_v14, %v1936_v63  ;;  %v1981_v59 = vadd.f32 %v2554_v0, %v1935_v25  ;;  %v1983_v45 = vadd.f32 %v2556_v13, %v1937_v20  ;;  %v2153_v33 = vperm.slane %v1980_v4, 0  ;;  %v2611_v63 = vld [vmem:[%s4383_s8] ss:$0 sm:$0xff]  ;;  %v2232_v13 = vld [vmem:[%s4385_s11 + $0x18] sm:$0xff] }
 0x307   :  { %v1926_v39 = vpop.f32.mrf.mxu3  ;;  %v2233_v14 = vld [vmem:[%s4385_s11 + $0x20] sm:$0xff] }
 0x308   :  { %v1927_v31 = vadd.f32 %v1926_v39, %v1900_v30  ;;  %v2010_v34 = vperm.slane %v1982_v51, 0  ;;  %v2038_v1 = vperm.slane %v1981_v59, 0  ;;  %v2076_v8 = vperm.slane %v1983_v45, 0  ;;  %2261 = vmatpush.msrb.mxu3 %v2233_v14  ;;  %v2229_v30 = vld [vmem:[%s4385_s11] sm:$0xff] }
 0x309   :  { %v2612_v51 = vld [vmem:[%s4384_s10] ss:$0 sm:$0xff] }
 0x30a   :  { %v1938_v3 = vrot.slane %v1927_v31, 2  ;;  %v2557_v22 = vrot.slane %v1927_v31, 9  ;;  %v2011_v17 = vsel %vm1314_vm12, %v2010_v34, %v2009_v15  ;;  %v2039_v23 = vsel %vm1314_vm12, %v2038_v1, %v2037_v16  ;;  %2262 = vmatpush.msrb.mxu3 %v2232_v13  ;;  %v2613_v39 = vld [vmem:[%s4386_s12] ss:$0 sm:$0xff] }
 0x30b   :  { %2569 = vmatmul.msk.f32.vlgmr.msra.gmra.mxu0 %vm2012_vm3, %v2011_v17  ;;  %2570 = vmatmul.msk.f32.vlgmr.msra.gmra.mxu1 %vm2012_vm3, %v2039_v23  ;;  %v2077_v11 = vsel %vm1314_vm12, %v2076_v8, %v2075_v2 }
 0x30c   :  { %v2558_v28 = vrot.slane %v1938_v3, 9  ;;  %v1984_v32 = vadd.f32 %v2557_v22, %v1927_v31  ;;  %2581 = vmatmul.msk.f32.vlgmr.msra.gmra.mxu3 %vm2012_vm3, %v2077_v11 }
 0x30d   :  { %2263 = vmatpush.msrb.mxu3 %v2231_v19 }
 0x30e   :  { %v1985_v6 = vadd.f32 %v2558_v28, %v1938_v3  ;;  %v2115_v53 = vperm.slane %v1984_v32, 0 }
 0x30f   :  { %2264 = vmatpush.msrb.mxu3 %v2230_v27 }
 0x310   :  { %v2154_v44 = vperm.slane %v1985_v6, 0  ;;  %v2116_v10 = vsel %vm1314_vm12, %v2115_v53, %v2114_v26 }
 0x311   :  { %2592 = vmatmul.msk.f32.vlgmr.msrb.gmra.mxu2 %vm2012_vm3, %v2116_v10  ;;  %2265 = vmatpush.msrb.mxu3 %v2229_v30 }
 0x312   :  { %v2155_v49 = vsel %vm1314_vm12, %v2154_v44, %v2153_v33 }
 0x313   :  { %2603 = vmatmul.msk.f32.vlgmr.msrb.gmra.mxu0 %vm2012_vm3, %v2155_v49 }
 0x388   :  { %v2032_v62 = vpop.f32.mrf.mxu0  ;;  %v2059_v37 = vpop.f32.mrf.mxu1 }
 0x389   :  { %v2060_v12 = vadd.f32 %v2059_v37, %v2032_v62 }
 0x38f   :  { %v2097_v38 = vpop.f32.mrf.mxu3 }
 0x390   :  { %v2100_v7 = vadd.f32 %v2097_v38, %v2060_v12  ;;  %v2175_v20 = vpop.f32.mrf.mxu0 }
 0x394   :  { %v2136_v60 = vpop.f32.mrf.mxu2 }
 0x395   :  { %v2139_v25 = vadd.f32 %v2136_v60, %v2100_v7 }
 0x397   :  { %v2178_v42 = vadd.f32 %v2175_v20, %v2139_v25 }
 0x399   :  { %v2183_v29 = vadd.f32 %v2611_v63, %v2178_v42 }
 0x39b   :  { %2654 = vtanh.f32 %v2183_v29 }
 0x3a1   :  { %v2655_v0 = vpop.eup %2654 }
 0x3a2   :  { %2604 = vmatmul.msk.f32.vlgmr.msrb.gmra.mxu1 %vm2204_vm4, %v2655_v0 }
 0x41f   :  { %v2225_v59 = vpop.f32.mrf.mxu1 }
 0x420   :  { %v2226_v45 = vadd.f32 %v2612_v51, %v2225_v59 }
 0x422   :  { %2656 = vtanh.f32 %v2226_v45 }
 0x428   :  { %v2657_v47 = vpop.eup %2656 }
 0x429   :  { %2606 = vmatmul.msk.f32.vlgmr.msrb.gmra.mxu3 %vm1337_vm2, %v2657_v47 }
 0x4ac   :  { %v2267_v15 = vpop.f32.mrf.mxu3 }
 0x4ad   :  { %v2268_v16 = vadd.f32 %v2613_v39, %v2267_v15 }
 0x4af   :  { %2270 = vst [vmem:[%s4387_s13] sm:$0x3] %v2268_v16 }

</bundles_post_ra>
